<compile_context>
chip_gen: v6e
topology: v6e:2x2x1
jax: 0.10.0
libtpu: 0.0.40
codegen_flags: <defaults>
</compile_context>

<pallas_src>
import functools
import math

import jax
import jax.numpy as jnp
from jax.experimental import pallas as pl


# -----------------------------------------------------------------------------
# Config (small, deterministic synthetic BERT)
# -----------------------------------------------------------------------------
VOCAB = 100
HIDDEN = 32
NUM_LAYERS = 2
NUM_HEADS = 2
HEAD_DIM = HIDDEN // NUM_HEADS
INTERMEDIATE = 64
MAX_POS = 16
TYPE_VOCAB = 2
NUM_CLASSES = 3
LN_EPS = 1e-12

BATCH = 2
SEQ = 8

CLS_PAD = 128            # lane-dense padded classifier output width
EMB_ROWS = 128           # stacked embedding table rows: 100 word + 16 pos + 2 type + zero pad
POS_OFF = VOCAB          # row offset of position embeddings in the stacked table
TYPE_OFF = VOCAB + MAX_POS

# ---- packed small-vector slab layout: one [VEC_ROWS, 128] f32 input ----
ROW_EMB_G, ROW_EMB_B, ROW_POOL_B, ROW_CLS_B = 0, 1, 2, 3
LAYER_BASE = 4
(OFF_BQKV, OFF_BO, OFF_LN1G, OFF_LN1B,
 OFF_B1, OFF_B2, OFF_LN2G, OFF_LN2B) = range(8)
ROWS_PER_LAYER = 8
VEC_ROWS = LAYER_BASE + ROWS_PER_LAYER * NUM_LAYERS      # 20


# -----------------------------------------------------------------------------
# Fused Pallas kernel: embeddings -> LN -> encoder layers -> pooler -> classifier
# -----------------------------------------------------------------------------
def _bert_fused_kernel(
    ids_ref,      # [B*S, 1] int32 token ids
    tt_ref,       # [B*S, 1] int32 token-type ids
    mask_ref,     # [B, S]   int32 attention mask (1 = keep)
    emb_ref,      # [EMB_ROWS, H] stacked word|pos|type embedding table (zero padded)
    wqkv_ref,     # [L, H, 3H]
    wo_ref,       # [L, H, H]
    w1_ref,       # [L, H, I]
    w2_ref,       # [L, I, H]
    pool_w_ref,   # [H, H]
    cls_w_ref,    # [H, CLS_PAD]
    vecs_ref,     # [VEC_ROWS, 128] packed small vectors (biases / LayerNorm params)
    out_ref,      # [B, CLS_PAD]
):
    def vrow(r, w):                      # static row/lane slice of the packed-vector slab
        return vecs_ref[r:r + 1, :w]     # [1, w]

    def layernorm(h, g, b):
        mu = jnp.mean(h, axis=-1, keepdims=True)
        var = jnp.mean((h - mu) * (h - mu), axis=-1, keepdims=True)
        return (h - mu) * jax.lax.rsqrt(var + LN_EPS) * g + b

    def gelu(h):
        # tanh approximation (EUP); see TODO at top regarding exact erf-GELU.
        return 0.5 * h * (1.0 + jnp.tanh(0.7978845608028654 * (h + 0.044715 * h * h * h)))

    # ---- fused embedding lookup: word + pos + type gathers as ONE one-hot MXU matmul ----
    ids = ids_ref[...]                                                       # [B*S, 1]
    tt = tt_ref[...]                                                         # [B*S, 1]
    col = jax.lax.broadcasted_iota(jnp.int32, (BATCH * SEQ, EMB_ROWS), 1)
    row = jax.lax.broadcasted_iota(jnp.int32, (BATCH * SEQ, EMB_ROWS), 0)
    pos = row & (SEQ - 1)                                                    # position = row mod SEQ
    onehot = ((col == ids)
              | (col == POS_OFF + pos)
              | (col == TYPE_OFF + tt)).astype(jnp.float32)                  # 3 ones per row
    x = jnp.dot(onehot, emb_ref[...], preferred_element_type=jnp.float32)    # [B*S, H]

    # Embedding LayerNorm.
    x = layernorm(x, vrow(ROW_EMB_G, HIDDEN), vrow(ROW_EMB_B, HIDDEN))

    # Additive attention-mask bias, built ONCE (layer- and head-invariant).
    att_bias = ((1.0 - mask_ref[...].astype(jnp.float32)) * -10000.0)[:, None, :]   # [B, 1, S]

    scale = 1.0 / math.sqrt(HEAD_DIM)

    for l in range(NUM_LAYERS):                         # static unroll (NUM_LAYERS = 2)
        base = LAYER_BASE + ROWS_PER_LAYER * l

        # ---- fused QKV projection: one MXU pass, 96-lane output ----
        qkv = (jnp.dot(x, wqkv_ref[l], preferred_element_type=jnp.float32)
               + vrow(base + OFF_BQKV, 3 * HIDDEN))                          # [B*S, 3H]
        qkv3 = qkv.reshape(BATCH, SEQ, 3 * HIDDEN)                           # layout-trivial split

        # ---- multi-head self-attention: batched over B, static loop over heads only ----
        head_ctx = []
        for h in range(NUM_HEADS):                      # static unroll (NUM_HEADS = 2)
            c0 = h * HEAD_DIM
            q = qkv3[:, :, c0:c0 + HEAD_DIM]                                 # [B, S, Dh]
            k = qkv3[:, :, HIDDEN + c0:HIDDEN + c0 + HEAD_DIM]
            v = qkv3[:, :, 2 * HIDDEN + c0:2 * HIDDEN + c0 + HEAD_DIM]
            s = jnp.einsum('bqd,bkd->bqk', q, k,
                           preferred_element_type=jnp.float32) * scale + att_bias
            m = jnp.max(s, axis=-1, keepdims=True)
            p = jnp.exp(s - m)
            # approx reciprocal hits the EUP slot; denominator >= 1 so stable
            # (not bit-exact vs. a PyTorch/HF reference at tight tolerances).
            p = p * pl.reciprocal(jnp.sum(p, axis=-1, keepdims=True), approx=True)
            head_ctx.append(jnp.einsum('bqk,bkd->bqd', p, v,
                                       preferred_element_type=jnp.float32))  # [B, S, Dh]
        ctx = jnp.concatenate(head_ctx, axis=-1).reshape(BATCH * SEQ, HIDDEN)

        attn_out = (jnp.dot(ctx, wo_ref[l], preferred_element_type=jnp.float32)
                    + vrow(base + OFF_BO, HIDDEN))
        x = layernorm(attn_out + x,
                      vrow(base + OFF_LN1G, HIDDEN), vrow(base + OFF_LN1B, HIDDEN))

        h1 = gelu(jnp.dot(x, w1_ref[l], preferred_element_type=jnp.float32)
                  + vrow(base + OFF_B1, INTERMEDIATE))
        h2 = (jnp.dot(h1, w2_ref[l], preferred_element_type=jnp.float32)
              + vrow(base + OFF_B2, HIDDEN))
        x = layernorm(h2 + x,
                      vrow(base + OFF_LN2G, HIDDEN), vrow(base + OFF_LN2B, HIDDEN))

    # ---- pooler: tanh(W @ hidden[:, 0] + b) — single reshape + [:, 0, :] slice ----
    cls_rows = x.reshape(BATCH, SEQ, HIDDEN)[:, 0, :]                         # [B, H]
    pooled = jnp.tanh(
        jnp.dot(cls_rows, pool_w_ref[...], preferred_element_type=jnp.float32)
        + vrow(ROW_POOL_B, HIDDEN))

    # ---- classifier head (output padded to 128 lanes -> lane-dense store) ----
    out_ref[...] = (jnp.dot(pooled, cls_w_ref[...], preferred_element_type=jnp.float32)
                    + vrow(ROW_CLS_B, CLS_PAD))


# -----------------------------------------------------------------------------
# Deterministic parameter construction (stacked, kernel-ready layout)
# -----------------------------------------------------------------------------
def init_params(key):
    std = 0.02
    keys = iter(jax.random.split(key, 16))

    def nrm(shape):
        return (std * jax.random.normal(next(keys), shape)).astype(jnp.float32)

    wq = nrm((NUM_LAYERS, HIDDEN, HIDDEN))
    wk = nrm((NUM_LAYERS, HIDDEN, HIDDEN))
    wv = nrm((NUM_LAYERS, HIDDEN, HIDDEN))

    # Stacked (word | pos | type | zero-pad) embedding table, 128 rows for a K-aligned matmul.
    emb_table = jnp.zeros((EMB_ROWS, HIDDEN), jnp.float32)
    emb_table = emb_table.at[:VOCAB].set(nrm((VOCAB, HIDDEN)))
    emb_table = emb_table.at[POS_OFF:POS_OFF + MAX_POS].set(nrm((MAX_POS, HIDDEN)))
    emb_table = emb_table.at[TYPE_OFF:TYPE_OFF + TYPE_VOCAB].set(nrm((TYPE_VOCAB, HIDDEN)))

    cls_w = nrm((HIDDEN, NUM_CLASSES))
    cls_w_pad = jnp.zeros((HIDDEN, CLS_PAD), jnp.float32).at[:, :NUM_CLASSES].set(cls_w)

    # Packed small-vector slab: all biases zero, all LayerNorm gammas one.
    vecs = jnp.zeros((VEC_ROWS, 128), jnp.float32)
    vecs = vecs.at[ROW_EMB_G, :HIDDEN].set(1.0)
    for l in range(NUM_LAYERS):
        base = LAYER_BASE + ROWS_PER_LAYER * l
        vecs = vecs.at[base + OFF_LN1G, :HIDDEN].set(1.0)
        vecs = vecs.at[base + OFF_LN2G, :HIDDEN].set(1.0)

    return {
        "emb_table": emb_table,
        # fused QKV: [L, H, 3H] = concat(Wq, Wk, Wv) along output lanes (head-major inside each)
        "wqkv": jnp.concatenate([wq, wk, wv], axis=2),
        "wo": nrm((NUM_LAYERS, HIDDEN, HIDDEN)),
        "w1": nrm((NUM_LAYERS, HIDDEN, INTERMEDIATE)),
        "w2": nrm((NUM_LAYERS, INTERMEDIATE, HIDDEN)),
        "pool_w": nrm((HIDDEN, HIDDEN)),
        "cls_w_pad": cls_w_pad,
        "vecs": vecs,
    }


# -----------------------------------------------------------------------------
# Forward pass (= FullModelBertClassifier.forward, eval mode / no dropout)
# -----------------------------------------------------------------------------
def bert_classifier_forward(params, ids, mask, token_type_ids):
    # Row-major [B, S] -> [B*S, 1] is a pure (bitcast) reshape; everything else is in-kernel.
    ids2 = ids.reshape(BATCH * SEQ, 1)
    tt2 = token_type_ids.reshape(BATCH * SEQ, 1)

    out_padded = pl.pallas_call(
        _bert_fused_kernel,
        out_shape=jax.ShapeDtypeStruct((BATCH, CLS_PAD), jnp.float32),
    )(
        ids2, tt2, mask,
        params["emb_table"],
        params["wqkv"], params["wo"], params["w1"], params["w2"],
        params["pool_w"], params["cls_w_pad"], params["vecs"],
    )
    return out_padded[:, :NUM_CLASSES]


# -----------------------------------------------------------------------------
# Main
# -----------------------------------------------------------------------------
if __name__ == "__main__":
    key = jax.random.PRNGKey(0)
    k_param, k_ids, k_tt = jax.random.split(key, 3)

    params = init_params(k_param)
    ids = jax.random.randint(k_ids, (BATCH, SEQ), 0, VOCAB, dtype=jnp.int32)
    token_type_ids = jax.random.randint(k_tt, (BATCH, SEQ), 0, TYPE_VOCAB, dtype=jnp.int32)
    # attention mask: first sequence fully valid, second has 2 padded positions
    mask = jnp.array([[1] * SEQ, [1] * (SEQ - 2) + [0] * 2], dtype=jnp.int32)

    fwd = jax.jit(functools.partial(bert_classifier_forward, params))
    logits = fwd(ids, mask, token_type_ids)
    jax.block_until_ready(logits)

    assert logits.shape == (BATCH, NUM_CLASSES)
    assert bool(jnp.all(jnp.isfinite(logits)))
    print("KERNEL_OK")
</pallas_src>

<mosaic_0001>
module attributes {stable_mosaic.version = 11 : i64} {
  func.func @_bert_fused_kernel(%arg0: memref<16x1xi32, #tpu.memory_space<vmem>>, %arg1: memref<16x1xi32, #tpu.memory_space<vmem>>, %arg2: memref<2x8xi32, #tpu.memory_space<vmem>>, %arg3: memref<128x32xf32, #tpu.memory_space<vmem>>, %arg4: memref<2x32x96xf32, #tpu.memory_space<vmem>>, %arg5: memref<2x32x32xf32, #tpu.memory_space<vmem>>, %arg6: memref<2x32x64xf32, #tpu.memory_space<vmem>>, %arg7: memref<2x64x32xf32, #tpu.memory_space<vmem>>, %arg8: memref<32x32xf32, #tpu.memory_space<vmem>>, %arg9: memref<32x128xf32, #tpu.memory_space<vmem>>, %arg10: memref<20x128xf32, #tpu.memory_space<vmem>>, %arg11: memref<2x128xf32, #tpu.memory_space<vmem>>) attributes {dimension_semantics = [], scalar_prefetch = 0 : i64, scratch_operands = 0 : i64, tpu.core_type = #tpu.core_type<tc>} {
    %c0 = arith.constant 0 : index
    %c0_0 = arith.constant 0 : index
    %0 = vector.load %arg0[%c0, %c0_0] : memref<16x1xi32, #tpu.memory_space<vmem>>, vector<16x1xi32>
    %c0_1 = arith.constant 0 : index
    %c0_2 = arith.constant 0 : index
    %1 = vector.load %arg1[%c0_1, %c0_2] : memref<16x1xi32, #tpu.memory_space<vmem>>, vector<16x1xi32>
    %2 = tpu.iota {dimensions = array<i32: 1>} : vector<16x128xi32>
    %3 = tpu.iota {dimensions = array<i32: 0>} : vector<16x128xi32>
    %c7_i32 = arith.constant 7 : i32
    %4 = vector.broadcast %c7_i32 : i32 to vector<16x128xi32>
    %5 = arith.andi %3, %4 : vector<16x128xi32>
    %6 = vector.broadcast %0 : vector<16x1xi32> to vector<16x128xi32>
    %7 = arith.cmpi eq, %2, %6 : vector<16x128xi32>
    %c100_i32 = arith.constant 100 : i32
    %8 = vector.broadcast %c100_i32 : i32 to vector<16x128xi32>
    %9 = arith.addi %8, %5 : vector<16x128xi32>
    %10 = arith.cmpi eq, %2, %9 : vector<16x128xi32>
    %11 = arith.ori %7, %10 : vector<16x128xi1>
    %c116_i32 = arith.constant 116 : i32
    %12 = vector.broadcast %c116_i32 : i32 to vector<16x1xi32>
    %13 = arith.addi %12, %1 : vector<16x1xi32>
    %14 = vector.broadcast %13 : vector<16x1xi32> to vector<16x128xi32>
    %15 = arith.cmpi eq, %2, %14 : vector<16x128xi32>
    %16 = arith.ori %11, %15 : vector<16x128xi1>
    %17 = arith.extui %16 : vector<16x128xi1> to vector<16x128xi32>
    %18 = arith.sitofp %17 : vector<16x128xi32> to vector<16x128xf32>
    %c0_3 = arith.constant 0 : index
    %c0_4 = arith.constant 0 : index
    %19 = vector.load %arg3[%c0_3, %c0_4] : memref<128x32xf32, #tpu.memory_space<vmem>>, vector<128x32xf32>
    %cst = arith.constant dense<0.000000e+00> : vector<16x32xf32>
    %20 = tpu.matmul %18, %19, %cst {dimension_numbers = #tpu.dot_dimension_numbers<[1], [0], [0], [1], [0, 0, 1, 1], [], []>} : vector<16x128xf32>, vector<128x32xf32>, vector<16x32xf32> -> vector<16x32xf32>
    %c0_5 = arith.constant 0 : index
    %c0_6 = arith.constant 0 : index
    %21 = vector.load %arg10[%c0_5, %c0_6] : memref<20x128xf32, #tpu.memory_space<vmem>>, vector<1x32xf32>
    %c1 = arith.constant 1 : index
    %c0_7 = arith.constant 0 : index
    %22 = vector.load %arg10[%c1, %c0_7] : memref<20x128xf32, #tpu.memory_space<vmem>>, vector<1x32xf32>
    %cst_8 = arith.constant dense<0.000000e+00> : vector<16xf32>
    %23 = vector.multi_reduction <add>, %20, %cst_8 [1] : vector<16x32xf32> to vector<16xf32>
    %24 = vector.shape_cast %23 : vector<16xf32> to vector<16x1xf32>
    %cst_9 = arith.constant 3.200000e+01 : f32
    %25 = vector.broadcast %cst_9 : f32 to vector<16x1xf32>
    %26 = arith.divf %24, %25 : vector<16x1xf32>
    %27 = vector.broadcast %26 : vector<16x1xf32> to vector<16x32xf32>
    %28 = arith.subf %20, %27 : vector<16x32xf32>
    %29 = vector.broadcast %26 : vector<16x1xf32> to vector<16x32xf32>
    %30 = arith.subf %20, %29 : vector<16x32xf32>
    %31 = arith.mulf %28, %30 : vector<16x32xf32>
    %cst_10 = arith.constant dense<0.000000e+00> : vector<16xf32>
    %32 = vector.multi_reduction <add>, %31, %cst_10 [1] : vector<16x32xf32> to vector<16xf32>
    %33 = vector.shape_cast %32 : vector<16xf32> to vector<16x1xf32>
    %cst_11 = arith.constant 3.200000e+01 : f32
    %34 = vector.broadcast %cst_11 : f32 to vector<16x1xf32>
    %35 = arith.divf %33, %34 : vector<16x1xf32>
    %36 = vector.broadcast %26 : vector<16x1xf32> to vector<16x32xf32>
    %37 = arith.subf %20, %36 : vector<16x32xf32>
    %cst_12 = arith.constant 9.99999996E-13 : f32
    %38 = vector.broadcast %cst_12 : f32 to vector<16x1xf32>
    %39 = arith.addf %35, %38 : vector<16x1xf32>
    %40 = math.rsqrt %39 : vector<16x1xf32>
    %41 = vector.broadcast %40 : vector<16x1xf32> to vector<16x32xf32>
    %42 = arith.mulf %37, %41 : vector<16x32xf32>
    %43 = vector.broadcast %21 : vector<1x32xf32> to vector<16x32xf32>
    %44 = arith.mulf %42, %43 : vector<16x32xf32>
    %45 = vector.broadcast %22 : vector<1x32xf32> to vector<16x32xf32>
    %46 = arith.addf %44, %45 : vector<16x32xf32>
    %c0_13 = arith.constant 0 : index
    %c0_14 = arith.constant 0 : index
    %47 = vector.load %arg2[%c0_13, %c0_14] : memref<2x8xi32, #tpu.memory_space<vmem>>, vector<2x8xi32>
    %48 = arith.sitofp %47 : vector<2x8xi32> to vector<2x8xf32>
    %cst_15 = arith.constant 1.000000e+00 : f32
    %49 = vector.broadcast %cst_15 : f32 to vector<2x8xf32>
    %50 = arith.subf %49, %48 : vector<2x8xf32>
    %cst_16 = arith.constant -1.000000e+04 : f32
    %51 = vector.broadcast %cst_16 : f32 to vector<2x8xf32>
    %52 = arith.mulf %50, %51 : vector<2x8xf32>
    %53 = vector.shape_cast %52 : vector<2x8xf32> to vector<2x1x8xf32>
    %c0_17 = arith.constant 0 : index
    %c0_18 = arith.constant 0 : index
    %c0_19 = arith.constant 0 : index
    %54 = vector.load %arg4[%c0_17, %c0_18, %c0_19] : memref<2x32x96xf32, #tpu.memory_space<vmem>>, vector<1x32x96xf32>
    %55 = vector.shape_cast %54 : vector<1x32x96xf32> to vector<32x96xf32>
    %cst_20 = arith.constant dense<0.000000e+00> : vector<16x96xf32>
    %56 = tpu.matmul %46, %55, %cst_20 {dimension_numbers = #tpu.dot_dimension_numbers<[1], [0], [0], [1], [0, 0, 1, 1], [], []>} : vector<16x32xf32>, vector<32x96xf32>, vector<16x96xf32> -> vector<16x96xf32>
    %c4 = arith.constant 4 : index
    %c0_21 = arith.constant 0 : index
    %57 = vector.load %arg10[%c4, %c0_21] : memref<20x128xf32, #tpu.memory_space<vmem>>, vector<1x96xf32>
    %58 = vector.broadcast %57 : vector<1x96xf32> to vector<16x96xf32>
    %59 = arith.addf %56, %58 : vector<16x96xf32>
    %60 = vector.shape_cast %59 : vector<16x96xf32> to vector<2x8x96xf32>
    %61 = vector.extract_strided_slice %60 {offsets = [0, 0, 0], sizes = [2, 8, 16], strides = [1, 1, 1]} : vector<2x8x96xf32> to vector<2x8x16xf32>
    %62 = vector.extract_strided_slice %60 {offsets = [0, 0, 32], sizes = [2, 8, 16], strides = [1, 1, 1]} : vector<2x8x96xf32> to vector<2x8x16xf32>
    %63 = vector.extract_strided_slice %60 {offsets = [0, 0, 64], sizes = [2, 8, 16], strides = [1, 1, 1]} : vector<2x8x96xf32> to vector<2x8x16xf32>
    "tpu.trace_start"() <{level = 10 : i32, message = "bqd,bkd->bqk"}> : () -> ()
    %cst_22 = arith.constant dense<0.000000e+00> : vector<2x8x8xf32>
    %64 = tpu.matmul %61, %62, %cst_22 {dimension_numbers = #tpu.dot_dimension_numbers<[2], [2], [1], [1], [0, 0, 0, 1, 1, 1], [0], [0]>} : vector<2x8x16xf32>, vector<2x8x16xf32>, vector<2x8x8xf32> -> vector<2x8x8xf32>
    "tpu.trace_stop"() : () -> ()
    %cst_23 = arith.constant 2.500000e-01 : f32
    %65 = vector.broadcast %cst_23 : f32 to vector<2x8x8xf32>
    %66 = arith.mulf %64, %65 : vector<2x8x8xf32>
    %67 = vector.broadcast %53 : vector<2x1x8xf32> to vector<2x8x8xf32>
    %68 = arith.addf %66, %67 : vector<2x8x8xf32>
    %cst_24 = arith.constant dense<0xFF800000> : vector<2x8xf32>
    %69 = vector.multi_reduction <maximumf>, %68, %cst_24 [2] : vector<2x8x8xf32> to vector<2x8xf32>
    %70 = vector.shape_cast %69 : vector<2x8xf32> to vector<2x8x1xf32>
    %71 = vector.broadcast %70 : vector<2x8x1xf32> to vector<2x8x8xf32>
    %72 = arith.subf %68, %71 : vector<2x8x8xf32>
    %73 = math.exp %72 : vector<2x8x8xf32>
    %cst_25 = arith.constant dense<0.000000e+00> : vector<2x8xf32>
    %74 = vector.multi_reduction <add>, %73, %cst_25 [2] : vector<2x8x8xf32> to vector<2x8xf32>
    %75 = vector.shape_cast %74 : vector<2x8xf32> to vector<2x8x1xf32>
    %76 = tpu.reciprocal %75 {approx = true} : vector<2x8x1xf32> -> vector<2x8x1xf32>
    %77 = vector.broadcast %76 : vector<2x8x1xf32> to vector<2x8x8xf32>
    %78 = arith.mulf %73, %77 : vector<2x8x8xf32>
    "tpu.trace_start"() <{level = 10 : i32, message = "bqk,bkd->bqd"}> : () -> ()
    %cst_26 = arith.constant dense<0.000000e+00> : vector<2x8x16xf32>
    %79 = tpu.matmul %78, %63, %cst_26 {dimension_numbers = #tpu.dot_dimension_numbers<[2], [1], [1], [2], [0, 0, 0, 1, 1, 2], [0], [0]>} : vector<2x8x8xf32>, vector<2x8x16xf32>, vector<2x8x16xf32> -> vector<2x8x16xf32>
    "tpu.trace_stop"() : () -> ()
    %80 = vector.extract_strided_slice %60 {offsets = [0, 0, 16], sizes = [2, 8, 16], strides = [1, 1, 1]} : vector<2x8x96xf32> to vector<2x8x16xf32>
    %81 = vector.extract_strided_slice %60 {offsets = [0, 0, 48], sizes = [2, 8, 16], strides = [1, 1, 1]} : vector<2x8x96xf32> to vector<2x8x16xf32>
    %82 = vector.extract_strided_slice %60 {offsets = [0, 0, 80], sizes = [2, 8, 16], strides = [1, 1, 1]} : vector<2x8x96xf32> to vector<2x8x16xf32>
    "tpu.trace_start"() <{level = 10 : i32, message = "bqd,bkd->bqk"}> : () -> ()
    %cst_27 = arith.constant dense<0.000000e+00> : vector<2x8x8xf32>
    %83 = tpu.matmul %80, %81, %cst_27 {dimension_numbers = #tpu.dot_dimension_numbers<[2], [2], [1], [1], [0, 0, 0, 1, 1, 1], [0], [0]>} : vector<2x8x16xf32>, vector<2x8x16xf32>, vector<2x8x8xf32> -> vector<2x8x8xf32>
    "tpu.trace_stop"() : () -> ()
    %cst_28 = arith.constant 2.500000e-01 : f32
    %84 = vector.broadcast %cst_28 : f32 to vector<2x8x8xf32>
    %85 = arith.mulf %83, %84 : vector<2x8x8xf32>
    %86 = vector.broadcast %53 : vector<2x1x8xf32> to vector<2x8x8xf32>
    %87 = arith.addf %85, %86 : vector<2x8x8xf32>
    %cst_29 = arith.constant dense<0xFF800000> : vector<2x8xf32>
    %88 = vector.multi_reduction <maximumf>, %87, %cst_29 [2] : vector<2x8x8xf32> to vector<2x8xf32>
    %89 = vector.shape_cast %88 : vector<2x8xf32> to vector<2x8x1xf32>
    %90 = vector.broadcast %89 : vector<2x8x1xf32> to vector<2x8x8xf32>
    %91 = arith.subf %87, %90 : vector<2x8x8xf32>
    %92 = math.exp %91 : vector<2x8x8xf32>
    %cst_30 = arith.constant dense<0.000000e+00> : vector<2x8xf32>
    %93 = vector.multi_reduction <add>, %92, %cst_30 [2] : vector<2x8x8xf32> to vector<2x8xf32>
    %94 = vector.shape_cast %93 : vector<2x8xf32> to vector<2x8x1xf32>
    %95 = tpu.reciprocal %94 {approx = true} : vector<2x8x1xf32> -> vector<2x8x1xf32>
    %96 = vector.broadcast %95 : vector<2x8x1xf32> to vector<2x8x8xf32>
    %97 = arith.mulf %92, %96 : vector<2x8x8xf32>
    "tpu.trace_start"() <{level = 10 : i32, message = "bqk,bkd->bqd"}> : () -> ()
    %cst_31 = arith.constant dense<0.000000e+00> : vector<2x8x16xf32>
    %98 = tpu.matmul %97, %82, %cst_31 {dimension_numbers = #tpu.dot_dimension_numbers<[2], [1], [1], [2], [0, 0, 0, 1, 1, 2], [0], [0]>} : vector<2x8x8xf32>, vector<2x8x16xf32>, vector<2x8x16xf32> -> vector<2x8x16xf32>
    "tpu.trace_stop"() : () -> ()
    %99 = tpu.concatenate %79, %98 in 2 : vector<2x8x16xf32>, vector<2x8x16xf32> -> vector<2x8x32xf32>
    %100 = vector.shape_cast %99 : vector<2x8x32xf32> to vector<16x32xf32>
    %c0_32 = arith.constant 0 : index
    %c0_33 = arith.constant 0 : index
    %c0_34 = arith.constant 0 : index
    %101 = vector.load %arg5[%c0_32, %c0_33, %c0_34] : memref<2x32x32xf32, #tpu.memory_space<vmem>>, vector<1x32x32xf32>
    %102 = vector.shape_cast %101 : vector<1x32x32xf32> to vector<32x32xf32>
    %cst_35 = arith.constant dense<0.000000e+00> : vector<16x32xf32>
    %103 = tpu.matmul %100, %102, %cst_35 {dimension_numbers = #tpu.dot_dimension_numbers<[1], [0], [0], [1], [0, 0, 1, 1], [], []>} : vector<16x32xf32>, vector<32x32xf32>, vector<16x32xf32> -> vector<16x32xf32>
    %c5 = arith.constant 5 : index
    %c0_36 = arith.constant 0 : index
    %104 = vector.load %arg10[%c5, %c0_36] : memref<20x128xf32, #tpu.memory_space<vmem>>, vector<1x32xf32>
    %105 = vector.broadcast %104 : vector<1x32xf32> to vector<16x32xf32>
    %106 = arith.addf %103, %105 : vector<16x32xf32>
    %107 = arith.addf %106, %46 : vector<16x32xf32>
    %c6 = arith.constant 6 : index
    %c0_37 = arith.constant 0 : index
    %108 = vector.load %arg10[%c6, %c0_37] : memref<20x128xf32, #tpu.memory_space<vmem>>, vector<1x32xf32>
    %c7 = arith.constant 7 : index
    %c0_38 = arith.constant 0 : index
    %109 = vector.load %arg10[%c7, %c0_38] : memref<20x128xf32, #tpu.memory_space<vmem>>, vector<1x32xf32>
    %cst_39 = arith.constant dense<0.000000e+00> : vector<16xf32>
    %110 = vector.multi_reduction <add>, %107, %cst_39 [1] : vector<16x32xf32> to vector<16xf32>
    %111 = vector.shape_cast %110 : vector<16xf32> to vector<16x1xf32>
    %cst_40 = arith.constant 3.200000e+01 : f32
    %112 = vector.broadcast %cst_40 : f32 to vector<16x1xf32>
    %113 = arith.divf %111, %112 : vector<16x1xf32>
    %114 = vector.broadcast %113 : vector<16x1xf32> to vector<16x32xf32>
    %115 = arith.subf %107, %114 : vector<16x32xf32>
    %116 = vector.broadcast %113 : vector<16x1xf32> to vector<16x32xf32>
    %117 = arith.subf %107, %116 : vector<16x32xf32>
    %118 = arith.mulf %115, %117 : vector<16x32xf32>
    %cst_41 = arith.constant dense<0.000000e+00> : vector<16xf32>
    %119 = vector.multi_reduction <add>, %118, %cst_41 [1] : vector<16x32xf32> to vector<16xf32>
    %120 = vector.shape_cast %119 : vector<16xf32> to vector<16x1xf32>
    %cst_42 = arith.constant 3.200000e+01 : f32
    %121 = vector.broadcast %cst_42 : f32 to vector<16x1xf32>
    %122 = arith.divf %120, %121 : vector<16x1xf32>
    %123 = vector.broadcast %113 : vector<16x1xf32> to vector<16x32xf32>
    %124 = arith.subf %107, %123 : vector<16x32xf32>
    %cst_43 = arith.constant 9.99999996E-13 : f32
    %125 = vector.broadcast %cst_43 : f32 to vector<16x1xf32>
    %126 = arith.addf %122, %125 : vector<16x1xf32>
    %127 = math.rsqrt %126 : vector<16x1xf32>
    %128 = vector.broadcast %127 : vector<16x1xf32> to vector<16x32xf32>
    %129 = arith.mulf %124, %128 : vector<16x32xf32>
    %130 = vector.broadcast %108 : vector<1x32xf32> to vector<16x32xf32>
    %131 = arith.mulf %129, %130 : vector<16x32xf32>
    %132 = vector.broadcast %109 : vector<1x32xf32> to vector<16x32xf32>
    %133 = arith.addf %131, %132 : vector<16x32xf32>
    %c0_44 = arith.constant 0 : index
    %c0_45 = arith.constant 0 : index
    %c0_46 = arith.constant 0 : index
    %134 = vector.load %arg6[%c0_44, %c0_45, %c0_46] : memref<2x32x64xf32, #tpu.memory_space<vmem>>, vector<1x32x64xf32>
    %135 = vector.shape_cast %134 : vector<1x32x64xf32> to vector<32x64xf32>
    %cst_47 = arith.constant dense<0.000000e+00> : vector<16x64xf32>
    %136 = tpu.matmul %133, %135, %cst_47 {dimension_numbers = #tpu.dot_dimension_numbers<[1], [0], [0], [1], [0, 0, 1, 1], [], []>} : vector<16x32xf32>, vector<32x64xf32>, vector<16x64xf32> -> vector<16x64xf32>
    %c8 = arith.constant 8 : index
    %c0_48 = arith.constant 0 : index
    %137 = vector.load %arg10[%c8, %c0_48] : memref<20x128xf32, #tpu.memory_space<vmem>>, vector<1x64xf32>
    %138 = vector.broadcast %137 : vector<1x64xf32> to vector<16x64xf32>
    %139 = arith.addf %136, %138 : vector<16x64xf32>
    %cst_49 = arith.constant 5.000000e-01 : f32
    %140 = vector.broadcast %cst_49 : f32 to vector<16x64xf32>
    %141 = arith.mulf %140, %139 : vector<16x64xf32>
    %cst_50 = arith.constant 4.471500e-02 : f32
    %142 = vector.broadcast %cst_50 : f32 to vector<16x64xf32>
    %143 = arith.mulf %142, %139 : vector<16x64xf32>
    %144 = arith.mulf %143, %139 : vector<16x64xf32>
    %145 = arith.mulf %144, %139 : vector<16x64xf32>
    %146 = arith.addf %139, %145 : vector<16x64xf32>
    %cst_51 = arith.constant 0.797884583 : f32
    %147 = vector.broadcast %cst_51 : f32 to vector<16x64xf32>
    %148 = arith.mulf %147, %146 : vector<16x64xf32>
    %149 = math.tanh %148 : vector<16x64xf32>
    %cst_52 = arith.constant 1.000000e+00 : f32
    %150 = vector.broadcast %cst_52 : f32 to vector<16x64xf32>
    %151 = arith.addf %150, %149 : vector<16x64xf32>
    %152 = arith.mulf %141, %151 : vector<16x64xf32>
    %c0_53 = arith.constant 0 : index
    %c0_54 = arith.constant 0 : index
    %c0_55 = arith.constant 0 : index
    %153 = vector.load %arg7[%c0_53, %c0_54, %c0_55] : memref<2x64x32xf32, #tpu.memory_space<vmem>>, vector<1x64x32xf32>
    %154 = vector.shape_cast %153 : vector<1x64x32xf32> to vector<64x32xf32>
    %cst_56 = arith.constant dense<0.000000e+00> : vector<16x32xf32>
    %155 = tpu.matmul %152, %154, %cst_56 {dimension_numbers = #tpu.dot_dimension_numbers<[1], [0], [0], [1], [0, 0, 1, 1], [], []>} : vector<16x64xf32>, vector<64x32xf32>, vector<16x32xf32> -> vector<16x32xf32>
    %c9 = arith.constant 9 : index
    %c0_57 = arith.constant 0 : index
    %156 = vector.load %arg10[%c9, %c0_57] : memref<20x128xf32, #tpu.memory_space<vmem>>, vector<1x32xf32>
    %157 = vector.broadcast %156 : vector<1x32xf32> to vector<16x32xf32>
    %158 = arith.addf %155, %157 : vector<16x32xf32>
    %159 = arith.addf %158, %133 : vector<16x32xf32>
    %c10 = arith.constant 10 : index
    %c0_58 = arith.constant 0 : index
    %160 = vector.load %arg10[%c10, %c0_58] : memref<20x128xf32, #tpu.memory_space<vmem>>, vector<1x32xf32>
    %c11 = arith.constant 11 : index
    %c0_59 = arith.constant 0 : index
    %161 = vector.load %arg10[%c11, %c0_59] : memref<20x128xf32, #tpu.memory_space<vmem>>, vector<1x32xf32>
    %cst_60 = arith.constant dense<0.000000e+00> : vector<16xf32>
    %162 = vector.multi_reduction <add>, %159, %cst_60 [1] : vector<16x32xf32> to vector<16xf32>
    %163 = vector.shape_cast %162 : vector<16xf32> to vector<16x1xf32>
    %cst_61 = arith.constant 3.200000e+01 : f32
    %164 = vector.broadcast %cst_61 : f32 to vector<16x1xf32>
    %165 = arith.divf %163, %164 : vector<16x1xf32>
    %166 = vector.broadcast %165 : vector<16x1xf32> to vector<16x32xf32>
    %167 = arith.subf %159, %166 : vector<16x32xf32>
    %168 = vector.broadcast %165 : vector<16x1xf32> to vector<16x32xf32>
    %169 = arith.subf %159, %168 : vector<16x32xf32>
    %170 = arith.mulf %167, %169 : vector<16x32xf32>
    %cst_62 = arith.constant dense<0.000000e+00> : vector<16xf32>
    %171 = vector.multi_reduction <add>, %170, %cst_62 [1] : vector<16x32xf32> to vector<16xf32>
    %172 = vector.shape_cast %171 : vector<16xf32> to vector<16x1xf32>
    %cst_63 = arith.constant 3.200000e+01 : f32
    %173 = vector.broadcast %cst_63 : f32 to vector<16x1xf32>
    %174 = arith.divf %172, %173 : vector<16x1xf32>
    %175 = vector.broadcast %165 : vector<16x1xf32> to vector<16x32xf32>
    %176 = arith.subf %159, %175 : vector<16x32xf32>
    %cst_64 = arith.constant 9.99999996E-13 : f32
    %177 = vector.broadcast %cst_64 : f32 to vector<16x1xf32>
    %178 = arith.addf %174, %177 : vector<16x1xf32>
    %179 = math.rsqrt %178 : vector<16x1xf32>
    %180 = vector.broadcast %179 : vector<16x1xf32> to vector<16x32xf32>
    %181 = arith.mulf %176, %180 : vector<16x32xf32>
    %182 = vector.broadcast %160 : vector<1x32xf32> to vector<16x32xf32>
    %183 = arith.mulf %181, %182 : vector<16x32xf32>
    %184 = vector.broadcast %161 : vector<1x32xf32> to vector<16x32xf32>
    %185 = arith.addf %183, %184 : vector<16x32xf32>
    %c1_65 = arith.constant 1 : index
    %c0_66 = arith.constant 0 : index
    %c0_67 = arith.constant 0 : index
    %186 = vector.load %arg4[%c1_65, %c0_66, %c0_67] : memref<2x32x96xf32, #tpu.memory_space<vmem>>, vector<1x32x96xf32>
    %187 = vector.shape_cast %186 : vector<1x32x96xf32> to vector<32x96xf32>
    %cst_68 = arith.constant dense<0.000000e+00> : vector<16x96xf32>
    %188 = tpu.matmul %185, %187, %cst_68 {dimension_numbers = #tpu.dot_dimension_numbers<[1], [0], [0], [1], [0, 0, 1, 1], [], []>} : vector<16x32xf32>, vector<32x96xf32>, vector<16x96xf32> -> vector<16x96xf32>
    %c12 = arith.constant 12 : index
    %c0_69 = arith.constant 0 : index
    %189 = vector.load %arg10[%c12, %c0_69] : memref<20x128xf32, #tpu.memory_space<vmem>>, vector<1x96xf32>
    %190 = vector.broadcast %189 : vector<1x96xf32> to vector<16x96xf32>
    %191 = arith.addf %188, %190 : vector<16x96xf32>
    %192 = vector.shape_cast %191 : vector<16x96xf32> to vector<2x8x96xf32>
    %193 = vector.extract_strided_slice %192 {offsets = [0, 0, 0], sizes = [2, 8, 16], strides = [1, 1, 1]} : vector<2x8x96xf32> to vector<2x8x16xf32>
    %194 = vector.extract_strided_slice %192 {offsets = [0, 0, 32], sizes = [2, 8, 16], strides = [1, 1, 1]} : vector<2x8x96xf32> to vector<2x8x16xf32>
    %195 = vector.extract_strided_slice %192 {offsets = [0, 0, 64], sizes = [2, 8, 16], strides = [1, 1, 1]} : vector<2x8x96xf32> to vector<2x8x16xf32>
    "tpu.trace_start"() <{level = 10 : i32, message = "bqd,bkd->bqk"}> : () -> ()
    %cst_70 = arith.constant dense<0.000000e+00> : vector<2x8x8xf32>
    %196 = tpu.matmul %193, %194, %cst_70 {dimension_numbers = #tpu.dot_dimension_numbers<[2], [2], [1], [1], [0, 0, 0, 1, 1, 1], [0], [0]>} : vector<2x8x16xf32>, vector<2x8x16xf32>, vector<2x8x8xf32> -> vector<2x8x8xf32>
    "tpu.trace_stop"() : () -> ()
    %cst_71 = arith.constant 2.500000e-01 : f32
    %197 = vector.broadcast %cst_71 : f32 to vector<2x8x8xf32>
    %198 = arith.mulf %196, %197 : vector<2x8x8xf32>
    %199 = vector.broadcast %53 : vector<2x1x8xf32> to vector<2x8x8xf32>
    %200 = arith.addf %198, %199 : vector<2x8x8xf32>
    %cst_72 = arith.constant dense<0xFF800000> : vector<2x8xf32>
    %201 = vector.multi_reduction <maximumf>, %200, %cst_72 [2] : vector<2x8x8xf32> to vector<2x8xf32>
    %202 = vector.shape_cast %201 : vector<2x8xf32> to vector<2x8x1xf32>
    %203 = vector.broadcast %202 : vector<2x8x1xf32> to vector<2x8x8xf32>
    %204 = arith.subf %200, %203 : vector<2x8x8xf32>
    %205 = math.exp %204 : vector<2x8x8xf32>
    %cst_73 = arith.constant dense<0.000000e+00> : vector<2x8xf32>
    %206 = vector.multi_reduction <add>, %205, %cst_73 [2] : vector<2x8x8xf32> to vector<2x8xf32>
    %207 = vector.shape_cast %206 : vector<2x8xf32> to vector<2x8x1xf32>
    %208 = tpu.reciprocal %207 {approx = true} : vector<2x8x1xf32> -> vector<2x8x1xf32>
    %209 = vector.broadcast %208 : vector<2x8x1xf32> to vector<2x8x8xf32>
    %210 = arith.mulf %205, %209 : vector<2x8x8xf32>
    "tpu.trace_start"() <{level = 10 : i32, message = "bqk,bkd->bqd"}> : () -> ()
    %cst_74 = arith.constant dense<0.000000e+00> : vector<2x8x16xf32>
    %211 = tpu.matmul %210, %195, %cst_74 {dimension_numbers = #tpu.dot_dimension_numbers<[2], [1], [1], [2], [0, 0, 0, 1, 1, 2], [0], [0]>} : vector<2x8x8xf32>, vector<2x8x16xf32>, vector<2x8x16xf32> -> vector<2x8x16xf32>
    "tpu.trace_stop"() : () -> ()
    %212 = vector.extract_strided_slice %192 {offsets = [0, 0, 16], sizes = [2, 8, 16], strides = [1, 1, 1]} : vector<2x8x96xf32> to vector<2x8x16xf32>
    %213 = vector.extract_strided_slice %192 {offsets = [0, 0, 48], sizes = [2, 8, 16], strides = [1, 1, 1]} : vector<2x8x96xf32> to vector<2x8x16xf32>
    %214 = vector.extract_strided_slice %192 {offsets = [0, 0, 80], sizes = [2, 8, 16], strides = [1, 1, 1]} : vector<2x8x96xf32> to vector<2x8x16xf32>
    "tpu.trace_start"() <{level = 10 : i32, message = "bqd,bkd->bqk"}> : () -> ()
    %cst_75 = arith.constant dense<0.000000e+00> : vector<2x8x8xf32>
    %215 = tpu.matmul %212, %213, %cst_75 {dimension_numbers = #tpu.dot_dimension_numbers<[2], [2], [1], [1], [0, 0, 0, 1, 1, 1], [0], [0]>} : vector<2x8x16xf32>, vector<2x8x16xf32>, vector<2x8x8xf32> -> vector<2x8x8xf32>
    "tpu.trace_stop"() : () -> ()
    %cst_76 = arith.constant 2.500000e-01 : f32
    %216 = vector.broadcast %cst_76 : f32 to vector<2x8x8xf32>
    %217 = arith.mulf %215, %216 : vector<2x8x8xf32>
    %218 = vector.broadcast %53 : vector<2x1x8xf32> to vector<2x8x8xf32>
    %219 = arith.addf %217, %218 : vector<2x8x8xf32>
    %cst_77 = arith.constant dense<0xFF800000> : vector<2x8xf32>
    %220 = vector.multi_reduction <maximumf>, %219, %cst_77 [2] : vector<2x8x8xf32> to vector<2x8xf32>
    %221 = vector.shape_cast %220 : vector<2x8xf32> to vector<2x8x1xf32>
    %222 = vector.broadcast %221 : vector<2x8x1xf32> to vector<2x8x8xf32>
    %223 = arith.subf %219, %222 : vector<2x8x8xf32>
    %224 = math.exp %223 : vector<2x8x8xf32>
    %cst_78 = arith.constant dense<0.000000e+00> : vector<2x8xf32>
    %225 = vector.multi_reduction <add>, %224, %cst_78 [2] : vector<2x8x8xf32> to vector<2x8xf32>
    %226 = vector.shape_cast %225 : vector<2x8xf32> to vector<2x8x1xf32>
    %227 = tpu.reciprocal %226 {approx = true} : vector<2x8x1xf32> -> vector<2x8x1xf32>
    %228 = vector.broadcast %227 : vector<2x8x1xf32> to vector<2x8x8xf32>
    %229 = arith.mulf %224, %228 : vector<2x8x8xf32>
    "tpu.trace_start"() <{level = 10 : i32, message = "bqk,bkd->bqd"}> : () -> ()
    %cst_79 = arith.constant dense<0.000000e+00> : vector<2x8x16xf32>
    %230 = tpu.matmul %229, %214, %cst_79 {dimension_numbers = #tpu.dot_dimension_numbers<[2], [1], [1], [2], [0, 0, 0, 1, 1, 2], [0], [0]>} : vector<2x8x8xf32>, vector<2x8x16xf32>, vector<2x8x16xf32> -> vector<2x8x16xf32>
    "tpu.trace_stop"() : () -> ()
    %231 = tpu.concatenate %211, %230 in 2 : vector<2x8x16xf32>, vector<2x8x16xf32> -> vector<2x8x32xf32>
    %232 = vector.shape_cast %231 : vector<2x8x32xf32> to vector<16x32xf32>
    %c1_80 = arith.constant 1 : index
    %c0_81 = arith.constant 0 : index
    %c0_82 = arith.constant 0 : index
    %233 = vector.load %arg5[%c1_80, %c0_81, %c0_82] : memref<2x32x32xf32, #tpu.memory_space<vmem>>, vector<1x32x32xf32>
    %234 = vector.shape_cast %233 : vector<1x32x32xf32> to vector<32x32xf32>
    %cst_83 = arith.constant dense<0.000000e+00> : vector<16x32xf32>
    %235 = tpu.matmul %232, %234, %cst_83 {dimension_numbers = #tpu.dot_dimension_numbers<[1], [0], [0], [1], [0, 0, 1, 1], [], []>} : vector<16x32xf32>, vector<32x32xf32>, vector<16x32xf32> -> vector<16x32xf32>
    %c13 = arith.constant 13 : index
    %c0_84 = arith.constant 0 : index
    %236 = vector.load %arg10[%c13, %c0_84] : memref<20x128xf32, #tpu.memory_space<vmem>>, vector<1x32xf32>
    %237 = vector.broadcast %236 : vector<1x32xf32> to vector<16x32xf32>
    %238 = arith.addf %235, %237 : vector<16x32xf32>
    %239 = arith.addf %238, %185 : vector<16x32xf32>
    %c14 = arith.constant 14 : index
    %c0_85 = arith.constant 0 : index
    %240 = vector.load %arg10[%c14, %c0_85] : memref<20x128xf32, #tpu.memory_space<vmem>>, vector<1x32xf32>
    %c15 = arith.constant 15 : index
    %c0_86 = arith.constant 0 : index
    %241 = vector.load %arg10[%c15, %c0_86] : memref<20x128xf32, #tpu.memory_space<vmem>>, vector<1x32xf32>
    %cst_87 = arith.constant dense<0.000000e+00> : vector<16xf32>
    %242 = vector.multi_reduction <add>, %239, %cst_87 [1] : vector<16x32xf32> to vector<16xf32>
    %243 = vector.shape_cast %242 : vector<16xf32> to vector<16x1xf32>
    %cst_88 = arith.constant 3.200000e+01 : f32
    %244 = vector.broadcast %cst_88 : f32 to vector<16x1xf32>
    %245 = arith.divf %243, %244 : vector<16x1xf32>
    %246 = vector.broadcast %245 : vector<16x1xf32> to vector<16x32xf32>
    %247 = arith.subf %239, %246 : vector<16x32xf32>
    %248 = vector.broadcast %245 : vector<16x1xf32> to vector<16x32xf32>
    %249 = arith.subf %239, %248 : vector<16x32xf32>
    %250 = arith.mulf %247, %249 : vector<16x32xf32>
    %cst_89 = arith.constant dense<0.000000e+00> : vector<16xf32>
    %251 = vector.multi_reduction <add>, %250, %cst_89 [1] : vector<16x32xf32> to vector<16xf32>
    %252 = vector.shape_cast %251 : vector<16xf32> to vector<16x1xf32>
    %cst_90 = arith.constant 3.200000e+01 : f32
    %253 = vector.broadcast %cst_90 : f32 to vector<16x1xf32>
    %254 = arith.divf %252, %253 : vector<16x1xf32>
    %255 = vector.broadcast %245 : vector<16x1xf32> to vector<16x32xf32>
    %256 = arith.subf %239, %255 : vector<16x32xf32>
    %cst_91 = arith.constant 9.99999996E-13 : f32
    %257 = vector.broadcast %cst_91 : f32 to vector<16x1xf32>
    %258 = arith.addf %254, %257 : vector<16x1xf32>
    %259 = math.rsqrt %258 : vector<16x1xf32>
    %260 = vector.broadcast %259 : vector<16x1xf32> to vector<16x32xf32>
    %261 = arith.mulf %256, %260 : vector<16x32xf32>
    %262 = vector.broadcast %240 : vector<1x32xf32> to vector<16x32xf32>
    %263 = arith.mulf %261, %262 : vector<16x32xf32>
    %264 = vector.broadcast %241 : vector<1x32xf32> to vector<16x32xf32>
    %265 = arith.addf %263, %264 : vector<16x32xf32>
    %c1_92 = arith.constant 1 : index
    %c0_93 = arith.constant 0 : index
    %c0_94 = arith.constant 0 : index
    %266 = vector.load %arg6[%c1_92, %c0_93, %c0_94] : memref<2x32x64xf32, #tpu.memory_space<vmem>>, vector<1x32x64xf32>
    %267 = vector.shape_cast %266 : vector<1x32x64xf32> to vector<32x64xf32>
    %cst_95 = arith.constant dense<0.000000e+00> : vector<16x64xf32>
    %268 = tpu.matmul %265, %267, %cst_95 {dimension_numbers = #tpu.dot_dimension_numbers<[1], [0], [0], [1], [0, 0, 1, 1], [], []>} : vector<16x32xf32>, vector<32x64xf32>, vector<16x64xf32> -> vector<16x64xf32>
    %c16 = arith.constant 16 : index
    %c0_96 = arith.constant 0 : index
    %269 = vector.load %arg10[%c16, %c0_96] : memref<20x128xf32, #tpu.memory_space<vmem>>, vector<1x64xf32>
    %270 = vector.broadcast %269 : vector<1x64xf32> to vector<16x64xf32>
    %271 = arith.addf %268, %270 : vector<16x64xf32>
    %cst_97 = arith.constant 5.000000e-01 : f32
    %272 = vector.broadcast %cst_97 : f32 to vector<16x64xf32>
    %273 = arith.mulf %272, %271 : vector<16x64xf32>
    %cst_98 = arith.constant 4.471500e-02 : f32
    %274 = vector.broadcast %cst_98 : f32 to vector<16x64xf32>
    %275 = arith.mulf %274, %271 : vector<16x64xf32>
    %276 = arith.mulf %275, %271 : vector<16x64xf32>
    %277 = arith.mulf %276, %271 : vector<16x64xf32>
    %278 = arith.addf %271, %277 : vector<16x64xf32>
    %cst_99 = arith.constant 0.797884583 : f32
    %279 = vector.broadcast %cst_99 : f32 to vector<16x64xf32>
    %280 = arith.mulf %279, %278 : vector<16x64xf32>
    %281 = math.tanh %280 : vector<16x64xf32>
    %cst_100 = arith.constant 1.000000e+00 : f32
    %282 = vector.broadcast %cst_100 : f32 to vector<16x64xf32>
    %283 = arith.addf %282, %281 : vector<16x64xf32>
    %284 = arith.mulf %273, %283 : vector<16x64xf32>
    %c1_101 = arith.constant 1 : index
    %c0_102 = arith.constant 0 : index
    %c0_103 = arith.constant 0 : index
    %285 = vector.load %arg7[%c1_101, %c0_102, %c0_103] : memref<2x64x32xf32, #tpu.memory_space<vmem>>, vector<1x64x32xf32>
    %286 = vector.shape_cast %285 : vector<1x64x32xf32> to vector<64x32xf32>
    %cst_104 = arith.constant dense<0.000000e+00> : vector<16x32xf32>
    %287 = tpu.matmul %284, %286, %cst_104 {dimension_numbers = #tpu.dot_dimension_numbers<[1], [0], [0], [1], [0, 0, 1, 1], [], []>} : vector<16x64xf32>, vector<64x32xf32>, vector<16x32xf32> -> vector<16x32xf32>
    %c17 = arith.constant 17 : index
    %c0_105 = arith.constant 0 : index
    %288 = vector.load %arg10[%c17, %c0_105] : memref<20x128xf32, #tpu.memory_space<vmem>>, vector<1x32xf32>
    %289 = vector.broadcast %288 : vector<1x32xf32> to vector<16x32xf32>
    %290 = arith.addf %287, %289 : vector<16x32xf32>
    %291 = arith.addf %290, %265 : vector<16x32xf32>
    %c18 = arith.constant 18 : index
    %c0_106 = arith.constant 0 : index
    %292 = vector.load %arg10[%c18, %c0_106] : memref<20x128xf32, #tpu.memory_space<vmem>>, vector<1x32xf32>
    %c19 = arith.constant 19 : index
    %c0_107 = arith.constant 0 : index
    %293 = vector.load %arg10[%c19, %c0_107] : memref<20x128xf32, #tpu.memory_space<vmem>>, vector<1x32xf32>
    %cst_108 = arith.constant dense<0.000000e+00> : vector<16xf32>
    %294 = vector.multi_reduction <add>, %291, %cst_108 [1] : vector<16x32xf32> to vector<16xf32>
    %295 = vector.shape_cast %294 : vector<16xf32> to vector<16x1xf32>
    %cst_109 = arith.constant 3.200000e+01 : f32
    %296 = vector.broadcast %cst_109 : f32 to vector<16x1xf32>
    %297 = arith.divf %295, %296 : vector<16x1xf32>
    %298 = vector.broadcast %297 : vector<16x1xf32> to vector<16x32xf32>
    %299 = arith.subf %291, %298 : vector<16x32xf32>
    %300 = vector.broadcast %297 : vector<16x1xf32> to vector<16x32xf32>
    %301 = arith.subf %291, %300 : vector<16x32xf32>
    %302 = arith.mulf %299, %301 : vector<16x32xf32>
    %cst_110 = arith.constant dense<0.000000e+00> : vector<16xf32>
    %303 = vector.multi_reduction <add>, %302, %cst_110 [1] : vector<16x32xf32> to vector<16xf32>
    %304 = vector.shape_cast %303 : vector<16xf32> to vector<16x1xf32>
    %cst_111 = arith.constant 3.200000e+01 : f32
    %305 = vector.broadcast %cst_111 : f32 to vector<16x1xf32>
    %306 = arith.divf %304, %305 : vector<16x1xf32>
    %307 = vector.broadcast %297 : vector<16x1xf32> to vector<16x32xf32>
    %308 = arith.subf %291, %307 : vector<16x32xf32>
    %cst_112 = arith.constant 9.99999996E-13 : f32
    %309 = vector.broadcast %cst_112 : f32 to vector<16x1xf32>
    %310 = arith.addf %306, %309 : vector<16x1xf32>
    %311 = math.rsqrt %310 : vector<16x1xf32>
    %312 = vector.broadcast %311 : vector<16x1xf32> to vector<16x32xf32>
    %313 = arith.mulf %308, %312 : vector<16x32xf32>
    %314 = vector.broadcast %292 : vector<1x32xf32> to vector<16x32xf32>
    %315 = arith.mulf %313, %314 : vector<16x32xf32>
    %316 = vector.broadcast %293 : vector<1x32xf32> to vector<16x32xf32>
    %317 = arith.addf %315, %316 : vector<16x32xf32>
    %318 = vector.shape_cast %317 : vector<16x32xf32> to vector<2x8x32xf32>
    %319 = vector.extract_strided_slice %318 {offsets = [0, 0, 0], sizes = [2, 1, 32], strides = [1, 1, 1]} : vector<2x8x32xf32> to vector<2x1x32xf32>
    %320 = vector.shape_cast %319 : vector<2x1x32xf32> to vector<2x32xf32>
    %c0_113 = arith.constant 0 : index
    %c0_114 = arith.constant 0 : index
    %321 = vector.load %arg8[%c0_113, %c0_114] : memref<32x32xf32, #tpu.memory_space<vmem>>, vector<32x32xf32>
    %cst_115 = arith.constant dense<0.000000e+00> : vector<2x32xf32>
    %322 = tpu.matmul %320, %321, %cst_115 {dimension_numbers = #tpu.dot_dimension_numbers<[1], [0], [0], [1], [0, 0, 1, 1], [], []>} : vector<2x32xf32>, vector<32x32xf32>, vector<2x32xf32> -> vector<2x32xf32>
    %c2 = arith.constant 2 : index
    %c0_116 = arith.constant 0 : index
    %323 = vector.load %arg10[%c2, %c0_116] : memref<20x128xf32, #tpu.memory_space<vmem>>, vector<1x32xf32>
    %324 = vector.broadcast %323 : vector<1x32xf32> to vector<2x32xf32>
    %325 = arith.addf %322, %324 : vector<2x32xf32>
    %326 = math.tanh %325 : vector<2x32xf32>
    %c0_117 = arith.constant 0 : index
    %c0_118 = arith.constant 0 : index
    %327 = vector.load %arg9[%c0_117, %c0_118] : memref<32x128xf32, #tpu.memory_space<vmem>>, vector<32x128xf32>
    %cst_119 = arith.constant dense<0.000000e+00> : vector<2x128xf32>
    %328 = tpu.matmul %326, %327, %cst_119 {dimension_numbers = #tpu.dot_dimension_numbers<[1], [0], [0], [1], [0, 0, 1, 1], [], []>} : vector<2x32xf32>, vector<32x128xf32>, vector<2x128xf32> -> vector<2x128xf32>
    %c3 = arith.constant 3 : index
    %c0_120 = arith.constant 0 : index
    %329 = vector.load %arg10[%c3, %c0_120] : memref<20x128xf32, #tpu.memory_space<vmem>>, vector<1x128xf32>
    %330 = vector.broadcast %329 : vector<1x128xf32> to vector<2x128xf32>
    %331 = arith.addf %328, %330 : vector<2x128xf32>
    %c0_121 = arith.constant 0 : index
    %c0_122 = arith.constant 0 : index
    %332 = vector.load %arg11[%c0_121, %c0_122] : memref<2x128xf32, #tpu.memory_space<vmem>>, vector<2x128xf32>
    tpu.vector_store %arg11[%c0_121, %c0_122], %331 {strides = array<i32>} : memref<2x128xf32, #tpu.memory_space<vmem>>, vector<2x128xf32>,
    return
  }
}

</mosaic_0001>

<bundles_post_ra>
// kernel: bert_classifier_forward.1
= control target key start
LH: loop header
LB: loop body
LE: loop exit
PB: predicated region body
PF: predicated region fallthrough
CT: control target
= control target key end

     0   :  { %16 = vsyncpa [#allocation3], 0  ;;  %s3907_s0 = inlined_call_operand.vmem [shape: s32[16,1], index: 0, kind: input, shape index: {}]   ;;  %s3908_s1 = inlined_call_operand.vmem [shape: s32[16,1], index: 1, kind: input, shape index: {}]   ;;  %s3909_s2 = inlined_call_operand.vmem [shape: s32[2,8], index: 2, kind: input, shape index: {}]   ;;  %s3910_s3 = inlined_call_operand.hbm [shape: f32[128,32], index: 3, kind: input, shape index: {}]   ;;  %s3911_s4 = inlined_call_operand.hbm [shape: f32[2,32,96], index: 4, kind: input, shape index: {}]   ;;  %s3912_s5 = inlined_call_operand.hbm [shape: f32[2,32,32], index: 5, kind: input, shape index: {}]   ;;  %s3913_s6 = inlined_call_operand.hbm [shape: f32[2,32,64], index: 6, kind: input, shape index: {}]   ;;  %s3914_s7 = inlined_call_operand.hbm [shape: f32[2,64,32], index: 7, kind: input, shape index: {}]   ;;  %s3915_s8 = inlined_call_operand.hbm [shape: f32[32,32], index: 8, kind: input, shape index: {}]   ;;  %s3916_s9 = inlined_call_operand.vmem [shape: f32[32,128], index: 9, kind: input, shape index: {}]   ;;  %s3917_s10 = inlined_call_operand.hbm [shape: f32[20,128], index: 10, kind: input, shape index: {}]   ;;  %s3918_s11 = inlined_call_operand.hbm [shape: f32[2,128], index: 11, kind: output, shape index: {}]  }
   0x1   :  { %17 = vsyncpa [#allocation6], 0 }
   0x2   :  { %18 = vsyncpa [#allocation9], 0 }
   0x3   :  { %19 = vsyncpa [#allocation12], 0 }
   0x4   :  { %20 = vsyncpa [#allocation4], 0  ;;  %s3502_s17 = smov [#allocation5]   ;;  %s3503_s19 = smov [#allocation8]  }
   0x5   :  { %s44_s18 = sshll.u32 %s3502_s17, 4  ;;  %s68_s20 = sshll.u32 %s3503_s19, 4  ;;  %s45_s18 = int_to_ptr.vmem [resolvable:$true] %s44_s18  ;;  %s69_s20 = int_to_ptr.vmem [resolvable:$true] %s68_s20 }
   0x6   :  { %s3340_s21 = scalar_lea.vmem %s45_s18, 1024  ;;  %p3345_p1 = scmp.lt.s32.totalorder %s45_s18, %s45_s18 }
   0x7   :  { %p3341_p0 = scmp.ne.s32.totalorder %s45_s18, %s3340_s21  ;;  %p3346_p2 = scmp.lt.s32.totalorder %s3340_s21, %s3340_s21 }
   0x9   :  { %p3347_p3 = por %p3346_p2, %p3345_p1 }
   0xb   :  { %p3348_p4 = pnand %p3347_p3, %p3341_p0 }
   0xd   :  { %3351 = shalt.err (!%p3348_p4)
}
   0xe   :  { %s3504_s22 = smov 128   ;;  %s3505_s23 = smov 8  }
   0xf   :  { %50 = dma.hbm_to_vmem [thread:$0]  %s3911_s4, 1024, %s45_s18, [#allocation6], %s3504_s22, %s3504_s22, %s3505_s23  }
  0x10   :  { %s3360_s26 = scalar_lea.vmem %s69_s20, 1024  ;;  %p3365_p6 = scmp.lt.s32.totalorder %s69_s20, %s69_s20 }
  0x11   :  { %p3361_p5 = scmp.ne.s32.totalorder %s69_s20, %s3360_s26  ;;  %p3366_p7 = scmp.lt.s32.totalorder %s3360_s26, %s3360_s26 }
  0x13   :  { %p3367_p8 = por %p3366_p7, %p3365_p6 }
  0x15   :  { %p3368_p9 = pnand %p3367_p8, %p3361_p5 }
  0x17   :  { %3371 = shalt.err (!%p3368_p9)
}
  0x18   :  { %74 = dma.hbm_to_vmem [thread:$0]  %s3913_s6, 1024, %s69_s20, [#allocation9], %s3504_s22, %s3504_s22, %s3505_s23  }
  0x19   :  { %s3506_s29 = smov [#allocation11]   ;;  %s3507_s12 = smov [#allocation2]  }
  0x1a   :  { %s92_s30 = sshll.u32 %s3506_s29, 4  ;;  %s32_s13 = sshll.u32 %s3507_s12, 4  ;;  %s93_s30 = int_to_ptr.vmem [resolvable:$true] %s92_s30  ;;  %s33_s13 = int_to_ptr.vmem [resolvable:$true] %s32_s13 }
  0x1b   :  { %s3380_s4 = scalar_lea.vmem %s93_s30, 512  ;;  %p3385_p11 = scmp.lt.s32.totalorder %s93_s30, %s93_s30 }
  0x1c   :  { %p3381_p10 = scmp.ne.s32.totalorder %s93_s30, %s3380_s4  ;;  %p3386_p12 = scmp.lt.s32.totalorder %s3380_s4, %s3380_s4 }
  0x1e   :  { %p3387_p13 = por %p3386_p12, %p3385_p11 }
  0x20   :  { %p3388_p0 = pnand %p3387_p13, %p3381_p10 }
  0x22   :  { %3391 = shalt.err (!%p3388_p0)
}
  0x23   :  { %98 = dma.hbm_to_vmem [thread:$0]  %s3915_s8, 512, %s93_s30, [#allocation12], %s3504_s22, %s3504_s22, %s3505_s23  }
  0x24   :  { %s3400_s6 = scalar_lea.vmem %s33_s13, 2048  ;;  %p3405_p2 = scmp.lt.s32.totalorder %s33_s13, %s33_s13 }
  0x25   :  { %p3401_p1 = scmp.ne.s32.totalorder %s33_s13, %s3400_s6  ;;  %p3406_p3 = scmp.lt.s32.totalorder %s3400_s6, %s3400_s6 }
  0x27   :  { %p3407_p4 = por %p3406_p3, %p3405_p2 }
  0x29   :  { %p3408_p5 = pnand %p3407_p4, %p3401_p1 }
  0x2b   :  { %3411 = shalt.err (!%p3408_p5)
}
  0x2c   :  { %38 = dma.hbm_to_vmem [thread:$0]  %s3910_s3, 2048, %s33_s13, [#allocation3], %s3504_s22, %s3504_s22, %s3505_s23  }
  0x2d   :  { %s3508_s18 = smov [#allocation7]   ;;  %s3509_s20 = smov [#allocation10]  }
  0x2e   :  { %s56_s19 = sshll.u32 %s3508_s18, 4  ;;  %s80_s21 = sshll.u32 %s3509_s20, 4  ;;  %s57_s19 = int_to_ptr.vmem [resolvable:$true] %s56_s19  ;;  %s81_s21 = int_to_ptr.vmem [resolvable:$true] %s80_s21 }
  0x2f   :  { %s3420_s8 = scalar_lea.vmem %s57_s19, 1024  ;;  %p3425_p7 = scmp.lt.s32.totalorder %s57_s19, %s57_s19 }
  0x30   :  { %p3421_p6 = scmp.ne.s32.totalorder %s57_s19, %s3420_s8  ;;  %p3426_p8 = scmp.lt.s32.totalorder %s3420_s8, %s3420_s8 }
  0x32   :  { %p3427_p9 = por %p3426_p8, %p3425_p7 }
  0x34   :  { %p3428_p10 = pnand %p3427_p9, %p3421_p6 }
  0x36   :  { %3431 = shalt.err (!%p3428_p10)
}
  0x37   :  { %62 = dma.hbm_to_vmem [thread:$0]  %s3912_s5, 1024, %s57_s19, [#allocation6], %s3504_s22, %s3504_s22, %s3505_s23  }
  0x38   :  { %s3440_s3 = scalar_lea.vmem %s81_s21, 2048  ;;  %p3445_p12 = scmp.lt.s32.totalorder %s81_s21, %s81_s21 }
  0x39   :  { %p3441_p11 = scmp.ne.s32.totalorder %s81_s21, %s3440_s3  ;;  %p3446_p13 = scmp.lt.s32.totalorder %s3440_s3, %s3440_s3 }
  0x3b   :  { %p3447_p0 = por %p3446_p13, %p3445_p12 }
  0x3d   :  { %p3448_p1 = pnand %p3447_p0, %p3441_p11 }
  0x3f   :  { %3451 = shalt.err (!%p3448_p1)
}
  0x40   :  { %86 = dma.hbm_to_vmem [thread:$0]  %s3914_s7, 2048, %s81_s21, [#allocation9], %s3504_s22, %s3504_s22, %s3505_s23  }
  0x41   :  { %s3510_s28 = smov [#allocation13]  }
  0x42   :  { %s106_s29 = sshll.u32 %s3510_s28, 4  ;;  %s107_s29 = int_to_ptr.vmem [resolvable:$true] %s106_s29 }
  0x43   :  { %s3460_s30 = scalar_lea.vmem %s107_s29, 384  ;;  %p3465_p3 = scmp.lt.s32.totalorder %s107_s29, %s107_s29 }
  0x44   :  { %p3461_p2 = scmp.ne.s32.totalorder %s107_s29, %s3460_s30  ;;  %p3466_p4 = scmp.lt.s32.totalorder %s3460_s30, %s3460_s30 }
  0x46   :  { %p3467_p5 = por %p3466_p4, %p3465_p3 }
  0x48   :  { %p3468_p6 = pnand %p3467_p5, %p3461_p2 }
  0x4a   :  { %3471 = shalt.err (!%p3468_p6)
}
  0x4b   :  { %112 = dma.hbm_to_vmem [thread:$0]  %s3917_s10, 384, %s107_s29, [#allocation12], %s3504_s22, %s3504_s22, %s3505_s23  }
  0x4c   :  { %3492 = dma.done.wait [#allocation3], 2048  }
  0x4d   :  { %3493 = vsyncadd [#allocation3], 4294965248 }
  0x4e   :  { %3494 = dma.done.wait [#allocation6], 2048  }
  0x4f   :  { %3495 = vsyncadd [#allocation6], 4294965248 }
  0x50   :  { %3496 = dma.done.wait [#allocation9], 3072  }
  0x51   :  { %3497 = vsyncadd [#allocation9], 4294964224 }
  0x52   :  { %3498 = dma.done.wait [#allocation12], 896  }
  0x53   :  { %3499 = vsyncadd [#allocation12], 4294966400  ;;  %v3511_v0 = vmov 0   ;;  %v134_v1 = vld [vmem:[%s3907_s0] sm:$0xff]  ;;  %v137_v4 = vld [vmem:[%s3908_s1 + $0x8] sm:$0xff]  ;;  %v138_v23 = vlaneseq  ;;  %v3512_v34 = vmov 1.0  }
  0x54   :  { %3268 = vset.pattern.permute.xlu0 %v3511_v0  ;;  %3269 = vset.pattern.permute.xlu1 %v3511_v0  ;;  %v136_v2 = vld [vmem:[%s3908_s1] sm:$0xff]  ;;  %v190_v5 = vld [vmem:[#allocation2 + $0x78] sm:$0xff]  ;;  %v189_v6 = vld [vmem:[#allocation2 + $0x70] sm:$0xff]  ;;  %v160_v8 = vadd.s32 116, %v137_v4  ;;  %vm268_vm10 = vcmask 261120   ;;  %vm3514_vm11 = vmmov 0  }
  0x55   :  { %146 = vperm.xlu0 %3268, %v134_v1   ;;  %v159_v3 = vadd.s32 116, %v136_v2  ;;  %v135_v7 = vld [vmem:[%s3907_s0 + $0x8] sm:$0xff]  ;;  %3006 = vmatprep.subr.mxu0 %v190_v5  ;;  %v187_v10 = vld [vmem:[#allocation2 + $0x60] sm:$0xff]  ;;  %v186_v11 = vld [vmem:[#allocation2 + $0x58] sm:$0xff]  ;;  %v3637_v24 = vshrl.u32 %v138_v23, 7  ;;  %v139_v27 = vand.u32 127, %v138_v23 }
  0x56   :  { %3007 = vmatpush3.msra.mxu0 %v190_v5  ;;  %v188_v9 = vld [vmem:[#allocation2 + $0x68] sm:$0xff]  ;;  %v185_v12 = vld [vmem:[#allocation2 + $0x50] sm:$0xff]  ;;  %v183_v14 = vld [vmem:[#allocation2 + $0x40] sm:$0xff]  ;;  %s3515_s0 = smov 96   ;;  %vm428_vm12 = vcmask 130048   ;;  %vm594_vm13 = vcmask 64512  }
  0x57   :  { %162 = vperm.xlu1 %3269, %v159_v3   ;;  %3008 = vmatprep.subr.mxu0 %v189_v6  ;;  %v184_v13 = vld [vmem:[#allocation2 + $0x48] sm:$0xff]  ;;  %v182_v15 = vld [vmem:[#allocation2 + $0x38] sm:$0xff]  ;;  %v181_v16 = vld [vmem:[#allocation2 + $0x30] sm:$0xff]  ;;  %v142_v25 = vadd.s32 8, %v3637_v24  ;;  %v143_v26 = vand.u32 7, %v3637_v24  ;;  %s3518_s16 = smov 80  }
  0x58   :  { %3009 = vmatpush3.msra.mxu0 %v189_v6  ;;  %v180_v17 = vld [vmem:[#allocation2 + $0x28] sm:$0xff]  ;;  %v179_v18 = vld [vmem:[#allocation2 + $0x20] sm:$0xff]  ;;  %v178_v19 = vld [vmem:[#allocation2 + $0x18] sm:$0xff]  ;;  %v3513_v6 = vmov 0.0   ;;  %s3519_s17 = smov 112   ;;  %s3520_s18 = smov 48  }
  0x59   :  { %149 = vperm.xlu0 %3268, %v135_v7   ;;  %3010 = vmatprep.subr.mxu0 %v188_v9  ;;  %v177_v20 = vld [vmem:[#allocation2 + $0x10] sm:$0xff]  ;;  %v176_v21 = vld [vmem:[#allocation2 + $0x8] sm:$0xff]  ;;  %v175_v22 = vld [vmem:[#allocation2] sm:$0xff]  ;;  %v144_v28 = vand.u32 7, %v142_v25  ;;  %v153_v29 = vadd.s32 100, %v143_v26  ;;  %v584_v25 = vsub.s32 0, %v3637_v24 }
  0x5a   :  { %3011 = vmatpush3.msra.mxu0 %v188_v9  ;;  %v338_v50 = vld [vmem:[#allocation5 + $0x18] sm:$0xff]  ;;  %v337_v51 = vld [vmem:[#allocation5 + $0x10] sm:$0xff]  ;;  %v336_v52 = vld [vmem:[#allocation5 + $0x8] sm:$0xff]  ;;  %s3521_s19 = smov 16   ;;  %vm1366_vm14 = vcmask 523264   ;;  %vm2648_vm15 = vcmask 1041409  }
  0x5b   :  { %165 = vperm.xlu1 %3269, %v160_v8   ;;  %3012 = vmatprep.subr.mxu0 %v187_v10  ;;  %v154_v30 = vadd.s32 100, %v144_v28  ;;  %vm155_vm0 = vcmp.eq.s32.totalorder %v139_v27, %v153_v29  ;;  %v335_v53 = vld [vmem:[#allocation5] sm:$0xff]  ;;  %s3522_s28 = smov [#allocation14]  }
  0x5c   :  { %3013 = vmatpush3.msra.mxu0 %v187_v10  ;;  %3041 = vmatprep.subr.mxu1 %v338_v50  ;;  %v2828_v61 = vld [vmem:[#allocation13] ss:$0 sm:$0xff]  ;;  %v2829_v63 = vld [vmem:[#allocation13 + $0x1] ss:$0 sm:$0xff]  ;;  %v2830_v7 = vld [vmem:[#allocation13 + $0x4] ss:$0 sm:$0xff] }
  0x5d   :  { %3014 = vmatprep.subr.mxu0 %v186_v11  ;;  %vm156_vm4 = vcmp.eq.s32.totalorder %v139_v27, %v154_v30  ;;  %3042 = vmatpush3.msra.mxu1 %v338_v50  ;;  %s2812_s29 = sshll.u32 %s3522_s28, 4  ;;  %s2813_s29 = int_to_ptr.vmem [resolvable:$true] %s2812_s29 }
  0x5e   :  { %3015 = vmatpush3.msra.mxu0 %v186_v11  ;;  %3043 = vmatprep.subr.mxu1 %v337_v51  ;;  %p3477_p8 = scmp.lt.s32.totalorder %s2813_s29, %s2813_s29 }
  0x5f   :  { %3016 = vmatprep.subr.mxu0 %v185_v12  ;;  %3044 = vmatpush3.msra.mxu1 %v337_v51 }
  0x60   :  { %3017 = vmatpush3.msra.mxu0 %v185_v12  ;;  %3045 = vmatprep.subr.mxu1 %v336_v52 }
  0x61   :  { %3018 = vmatprep.subr.mxu0 %v184_v13  ;;  %3046 = vmatpush3.msra.mxu1 %v336_v52 }
  0x62   :  { %3019 = vmatpush3.msra.mxu0 %v184_v13  ;;  %3047 = vmatprep.subr.mxu1 %v335_v53 }
  0x63   :  { %3020 = vmatprep.subr.mxu0 %v183_v14  ;;  %3048 = vmatpush3.msra.mxu1 %v335_v53 }
  0x64   :  { %3021 = vmatpush3.msra.mxu0 %v183_v14  ;;  %3052 = vmatprep.subr.mxu1 %v3513_v6  ;;  %v308_v14 = vld [vmem:[%s3909_s2] sm:$0x3]  ;;  %s3517_s2 = smov 64  }
  0x65   :  { %3022 = vmatprep.subr.mxu0 %v182_v15 }
  0x66   :  { %3023 = vmatpush3.msra.mxu0 %v182_v15  ;;  %v309_v15 = vcvt.s32.f32 %v308_v14 }
  0x67   :  { %3024 = vmatprep.subr.mxu0 %v181_v16 }
  0x68   :  { %3025 = vmatpush3.msra.mxu0 %v181_v16  ;;  %v3516_v16 = vmov 1966171168  }
  0x69   :  { %3026 = vmatprep.subr.mxu0 %v180_v17 }
  0x6a   :  { %3027 = vmatpush3.msra.mxu0 %v180_v17  ;;  %v314_v17 = vunpack.c.l.s4 %v3516_v16 }
  0x6b   :  { %3028 = vmatprep.subr.mxu0 %v179_v18 }
  0x6c   :  { %3029 = vmatpush3.msra.mxu0 %v179_v18  ;;  %v310_v18 = vsub.f32 1.0, %v309_v15 }
  0x6d   :  { %3030 = vmatprep.subr.mxu0 %v178_v19 }
  0x6e   :  { %3031 = vmatpush3.msra.mxu0 %v178_v19  ;;  %v315_v19 = vunpack.c.0.s8 %v314_v17 }
  0x6f   :  { %3032 = vmatprep.subr.mxu0 %v177_v20 }
  0x70   :  { %3033 = vmatpush3.msra.mxu0 %v177_v20  ;;  %v311_v20 = vmul.f32 -10000.0, %v310_v18 }
  0x71   :  { %3034 = vmatprep.subr.mxu0 %v176_v21 }
  0x72   :  { %3035 = vmatpush3.msra.mxu0 %v176_v21  ;;  %v318_v21 = vsub.s32 %v315_v19, %v3637_v24 }
  0x73   :  { %3036 = vmatprep.subr.mxu0 %v175_v22 }
  0x74   :  { %3037 = vmatpush3.msra.mxu0 %v175_v22  ;;  %v319_v22 = vrot.slane %v311_v20, %v318_v21 }
  0x75   :  { %3082 = vmatprep.subr.mxu0 %v3513_v6 }
  0x76   :  { %v327_v23 = vrot.slane %v319_v22, %v318_v21  ;;  %v320_v26 = vcombine.high %v319_v22, %v319_v22 }
  0x78   :  { %v334_v28 = vrot.slane %v320_v26, %v318_v21 }
  0xd0   :  { %v147_v31 = vpop.permute.xlu0 %146 }
  0xd1   :  { %vm151_vm1 = vcmp.eq.s32.totalorder %v139_v27, %v147_v31 }
  0xd2   :  { %v163_v32 = vpop.permute.xlu1 %162  ;;  %vm157_vm2 = vmor %vm151_vm1, %vm155_vm0 }
  0xd3   :  { %vm167_vm3 = vcmp.eq.s32.totalorder %v139_v27, %v163_v32 }
  0xd4   :  { %v150_v33 = vpop.permute.xlu0 %149  ;;  %vm169_vm5 = vmor %vm157_vm2, %vm167_vm3 }
  0xd5   :  { %vm152_vm6 = vcmp.eq.s32.totalorder %v139_v27, %v150_v33  ;;  %3038 = vmatprep.mubr.msk.f32.mxu0 %vm169_vm5, %v3512_v34  ;;  %v3687_v33 = vrot.slane %v334_v28, %v584_v25 }
  0xd6   :  { %vm158_vm7 = vmor %vm152_vm6, %vm156_vm4  ;;  %v166_v35 = vpop.permute.xlu1 %165 }
  0xd7   :  { %vm168_vm8 = vcmp.eq.s32.totalorder %v139_v27, %v166_v35  ;;  %v3684_v27 = vrot.slane %v327_v23, %v584_v25 }
  0xd8   :  { %vm170_vm9 = vmor %vm158_vm7, %vm168_vm8 }
  0xd9   :  { %3039 = vmatmul.mubr.msk.f32.vlgmr.msra.gmra.mxu0 %vm170_vm9, %v3512_v34 }
  0xda   :  { %3084 = vmatprep.mubr.msk.f32.mxu0 %vm3514_vm11, %v3513_v6 }
 0x199   :  { %v3040_v36 = vpop.f32.mrf.mxu0 }
 0x19a   :  { %v272_v37 = vsel %vm268_vm10, %v3040_v36, 0.0 }
 0x19b   :  { %273 = vadd.xlane.f32.xlu1 %v272_v37  ;;  %v257_v38 = vpop.f32.mrf.mxu0 }
 0x19c   :  { %v269_v39 = vsel %vm268_vm10, %v257_v38, 0.0 }
 0x19d   :  { %270 = vadd.xlane.f32.xlu0 %v269_v39 }
 0x224   :  { %v274_v40 = vpop.xlane.xlu1 %273 }
 0x225   :  { %v277_v41 = vmul.f32 0.03125, %v274_v40 }
 0x226   :  { %v271_v42 = vpop.xlane.xlu0 %270 }
 0x227   :  { %v276_v43 = vmul.f32 0.03125, %v271_v42  ;;  %v279_v44 = vsub.f32 %v3040_v36, %v277_v41 }
 0x229   :  { %v278_v45 = vsub.f32 %v257_v38, %v276_v43  ;;  %v281_v48 = vmul.f32 %v279_v44, %v279_v44 }
 0x22b   :  { %v280_v46 = vmul.f32 %v278_v45, %v278_v45  ;;  %v285_v49 = vsel %vm268_vm10, %v281_v48, 0.0 }
 0x22d   :  { %v282_v47 = vsel %vm268_vm10, %v280_v46, 0.0 }
 0x22e   :  { %283 = vadd.xlane.f32.xlu0 %v282_v47 }
 0x232   :  { %286 = vadd.xlane.f32.xlu0 %v285_v49 }
 0x2b7   :  { %v284_v54 = vpop.xlane.xlu0 %283 }
 0x2b8   :  { %v288_v55 = vmul.f32 0.03125, %v284_v54 }
 0x2ba   :  { %v290_v56 = vadd.f32 1e-12, %v288_v55 }
 0x2bb   :  { %v287_v57 = vpop.xlane.xlu0 %286 }
 0x2bc   :  { %3270 = vrsqrt.f32 %v290_v56  ;;  %v289_v58 = vmul.f32 0.03125, %v287_v57 }
 0x2be   :  { %v291_v59 = vadd.f32 1e-12, %v289_v58 }
 0x2c0   :  { %3272 = vrsqrt.f32 %v291_v59 }
 0x2c9   :  { %v3271_v60 = vpop.eup %3270 }
 0x2ca   :  { %v294_v62 = vmul.f32 %v3271_v60, %v278_v45 }
 0x2cc   :  { %v300_v0 = vmul.f32 %v2828_v61, %v294_v62 }
 0x2cd   :  { %v3273_v1 = vpop.eup %3272 }
 0x2ce   :  { %v295_v2 = vmul.f32 %v3273_v1, %v279_v44  ;;  %v3645_v3 = vadd.f32 %v2829_v63, %v300_v0 }
 0x2d0   :  { %v301_v4 = vmul.f32 %v2828_v61, %v295_v2  ;;  %3049 = vmatprep.mubr.msk.f32.mxu1 %vm268_vm10, %v3645_v3 }
 0x2d2   :  { %v3649_v5 = vadd.f32 %v2829_v63, %v301_v4 }
 0x2d4   :  { %3050 = vmatmul.mubr.msk.f32.vlgmr.msra.gmra.mxu1 %vm268_vm10, %v3649_v5 }
 0x2d5   :  { %3054 = vmatprep.mubr.msk.f32.mxu1 %vm3514_vm11, %v3513_v6 }
 0x394   :  { %v3051_v8 = vpop.f32.mrf.mxu1 }
 0x395   :  { %v3659_v9 = vadd.f32 %v3051_v8, %v2830_v7 }
 0x396   :  { %v416_v10 = vpop.f32.mrf.mxu1 }
 0x397   :  { %v3661_v11 = vadd.f32 %v2830_v7, %v416_v10  ;;  %504 = vrot.lane.b32.xlu0 %v3659_v9, %s3515_s0 }
 0x399   :  { %426 = vrot.lane.b32.xlu1 %v3661_v11, %s3515_s0 }
 0x409   :  { %v505_v13 = vpop.permute.xlu0 %504 }
 0x40b   :  { %v427_v12 = vpop.permute.xlu1 %426 }
 0x40c   :  { %3053 = vmatpush3.xpose.msk.msra.mxu1 %vm428_vm12, %v427_v12 }
 0x40d   :  { %3057 = vmatprep.subr.mxu1 %v3513_v6 }
 0x40f   :  { %3055 = vmatmul.mubr.msk.f32.vlgmr.msra.gmra.mxu1 %vm428_vm12, %v3661_v11 }
 0x410   :  { %3058 = vmatpush3.xpose.msk.msra.mxu1 %vm428_vm12, %v505_v13  ;;  %3059 = vmatprep.mubr.msk.f32.mxu1 %vm3514_vm11, %v3513_v6 }
 0x411   :  { %3062 = vmatprep.subr.mxu1 %v3513_v6 }
 0x413   :  { %3060 = vmatmul.mubr.msk.f32.vlgmr.msra.gmra.mxu1 %vm428_vm12, %v3659_v9 }
 0x414   :  { %3064 = vmatprep.mubr.msk.f32.mxu1 %vm3514_vm11, %v3513_v6 }
 0x4cf   :  { %v499_v29 = vpop.f32.mrf.mxu1 }
 0x4d0   :  { %v580_v30 = vmul.f32 0.25, %v499_v29 }
 0x4d1   :  { %v3056_v31 = vpop.f32.mrf.mxu1 }
 0x4d2   :  { %v592_v32 = vadd.f32 %v3684_v27, %v580_v30 }
 0x4d3   :  { %v576_v34 = vpop.f32.mrf.mxu1 }
 0x4d4   :  { %v581_v35 = vmul.f32 0.25, %v576_v34  ;;  %v595_v36 = vsel %vm594_vm13, %v592_v32, -inf }
 0x4d5   :  { %596 = vmax.xlane.f32.xlu1 %v595_v36  ;;  %v3061_v37 = vpop.f32.mrf.mxu1  ;;  %v1116_v36 = vld [vmem:[#allocation7 + $0x18] sm:$0xff] }
 0x4d6   :  { %v593_v24 = vadd.f32 %v3687_v33, %v581_v35  ;;  %v1115_v37 = vld [vmem:[#allocation7 + $0x10] sm:$0xff] }
 0x4d8   :  { %v598_v38 = vsel %vm594_vm13, %v593_v24, -inf }
 0x4d9   :  { %599 = vmax.xlane.f32.xlu0 %v598_v38 }
 0x4e6   :  { %617 = vrot.lane.b32.xlu1 %v3661_v11, %s3517_s2 }
 0x55e   :  { %v597_v39 = vpop.xlane.xlu1 %596 }
 0x55f   :  { %v601_v40 = vsub.f32 %v592_v32, %v597_v39 }
 0x561   :  { %v603_v41 = vmul.f32 1.442695, %v601_v40 }
 0x562   :  { %v618_v42 = vpop.permute.xlu1 %617  ;;  %v600_v43 = vpop.xlane.xlu0 %599 }
 0x563   :  { %3274 = vpow2.f32 %v603_v41  ;;  %v602_v44 = vsub.f32 %v593_v24, %v600_v43  ;;  %3063 = vmatpush3.msra.mxu1 %v618_v42  ;;  %v1113_v24 = vld [vmem:[#allocation7] sm:$0xff] }
 0x564   :  { %3067 = vmatprep.subr.mxu1 %v3513_v6 }
 0x565   :  { %v605_v45 = vmul.f32 1.442695, %v602_v44 }
 0x567   :  { %3276 = vpow2.f32 %v605_v45 }
 0x570   :  { %v3275_v46 = vpop.eup %3274 }
 0x571   :  { %v607_v47 = vsel %vm594_vm13, %v3275_v46, 0.0 }
 0x572   :  { %608 = vadd.xlane.f32.xlu1 %v607_v47 }
 0x574   :  { %v3277_v48 = vpop.eup %3276 }
 0x575   :  { %v610_v49 = vsel %vm594_vm13, %v3277_v48, 0.0 }
 0x576   :  { %611 = vadd.xlane.f32.xlu0 %v610_v49 }
 0x583   :  { %771 = vrot.lane.b32.xlu1 %v3661_v11, %s3518_s16 }
 0x587   :  { %769 = vrot.lane.b32.xlu1 %v3661_v11, %s3519_s17 }
 0x58b   :  { %847 = vrot.lane.b32.xlu1 %v3659_v9, %s3519_s17 }
 0x58c   :  { %693 = vrot.lane.b32.xlu0 %v3659_v9, %s3517_s2 }
 0x590   :  { %849 = vrot.lane.b32.xlu0 %v3659_v9, %s3518_s16 }
 0x5fb   :  { %v609_v50 = vpop.xlane.xlu1 %608 }
 0x5fc   :  { %3278 = vrcp.f32 %v609_v50 }
 0x5ff   :  { %v612_v51 = vpop.xlane.xlu0 %611  ;;  %v772_v54 = vpop.permute.xlu1 %771 }
 0x600   :  { %3280 = vrcp.f32 %v612_v51 }
 0x603   :  { %v694_v55 = vpop.permute.xlu0 %693  ;;  %v770_v58 = vpop.permute.xlu1 %769 }
 0x607   :  { %v850_v59 = vpop.permute.xlu0 %849  ;;  %v848_v60 = vpop.permute.xlu1 %847 }
 0x609   :  { %v3279_v52 = vpop.eup %3278 }
 0x60a   :  { %v615_v53 = vmul.f32 %v3279_v52, %v3275_v46  ;;  %v2845_v46 = vld [vmem:[#allocation13 + $0x5] ss:$0 sm:$0xff] }
 0x60c   :  { %3065 = vmatmul.mubr.msk.f32.vlgmr.msra.gmra.mxu1 %vm594_vm13, %v615_v53 }
 0x60d   :  { %v3281_v56 = vpop.eup %3280  ;;  %3068 = vmatpush3.msra.mxu1 %v694_v55  ;;  %3069 = vmatprep.mubr.msk.f32.mxu1 %vm3514_vm11, %v3513_v6 }
 0x60e   :  { %3072 = vmatprep.subr.mxu1 %v3513_v6  ;;  %v616_v57 = vmul.f32 %v3281_v56, %v3277_v48 }
 0x610   :  { %3070 = vmatmul.mubr.msk.f32.vlgmr.msra.gmra.mxu1 %vm594_vm13, %v616_v57 }
 0x611   :  { %3073 = vmatpush3.xpose.msk.msra.mxu1 %vm428_vm12, %v772_v54  ;;  %3074 = vmatprep.mubr.msk.f32.mxu1 %vm3514_vm11, %v3513_v6 }
 0x612   :  { %3077 = vmatprep.subr.mxu1 %v3513_v6 }
 0x614   :  { %3075 = vmatmul.mubr.msk.f32.vlgmr.msra.gmra.mxu1 %vm428_vm12, %v770_v58 }
 0x615   :  { %3078 = vmatpush3.xpose.msk.msra.mxu1 %vm428_vm12, %v850_v59  ;;  %3079 = vmatprep.mubr.msk.f32.mxu1 %vm3514_vm11, %v3513_v6 }
 0x616   :  { %3087 = vmatprep.subr.mxu1 %v3513_v6 }
 0x618   :  { %3080 = vmatmul.mubr.msk.f32.vlgmr.msra.gmra.mxu1 %vm428_vm12, %v848_v60 }
 0x619   :  { %3089 = vmatprep.mubr.msk.f32.mxu1 %vm3514_vm11, %v3513_v6 }
 0x6cc   :  { %v3724_v61 = vpop.f32.mrf.mxu1 }
 0x6ce   :  { %v3066_v62 = vpop.f32.mrf.mxu1 }
 0x6d0   :  { %v3726_v63 = vpop.f32.mrf.mxu1 }
 0x6d2   :  { %v3071_v0 = vpop.f32.mrf.mxu1 }
 0x6d3   :  { %v1248_v0 = vld [vmem:[#allocation8 + $0x18] sm:$0xff] }
 0x6d4   :  { %v843_v1 = vpop.f32.mrf.mxu1 }
 0x6d5   :  { %v925_v2 = vmul.f32 0.25, %v843_v1  ;;  %v1246_v1 = vld [vmem:[#allocation8 + $0x8] sm:$0xff] }
 0x6d6   :  { %v3076_v4 = vpop.f32.mrf.mxu1 }
 0x6d7   :  { %v927_v7 = vadd.f32 %v925_v2, %v3684_v27  ;;  %v1245_v2 = vld [vmem:[#allocation8] sm:$0xff] }
 0x6d8   :  { %v921_v8 = vpop.f32.mrf.mxu1 }
 0x6d9   :  { %v926_v10 = vmul.f32 0.25, %v921_v8  ;;  %v929_v12 = vsel %vm594_vm13, %v927_v7, -inf }
 0x6da   :  { %930 = vmax.xlane.f32.xlu0 %v929_v12  ;;  %v3081_v13 = vpop.f32.mrf.mxu1 }
 0x6db   :  { %v928_v14 = vadd.f32 %v926_v10, %v3687_v33 }
 0x6dd   :  { %v932_v15 = vsel %vm594_vm13, %v928_v14, -inf }
 0x6de   :  { %933 = vmax.xlane.f32.xlu1 %v932_v15  ;;  %v2848_v15 = vld [vmem:[#allocation13 + $0x6] ss:$0 sm:$0xff] }
 0x6ef   :  { %951 = vrot.lane.b32.xlu1 %v3661_v11, %s3520_s18 }
 0x763   :  { %v931_v16 = vpop.xlane.xlu0 %930 }
 0x764   :  { %v935_v17 = vsub.f32 %v927_v7, %v931_v16 }
 0x766   :  { %v937_v18 = vmul.f32 1.442695, %v935_v17  ;;  %v2849_v17 = vld [vmem:[#allocation13 + $0x7] ss:$0 sm:$0xff] }
 0x767   :  { %v934_v19 = vpop.xlane.xlu1 %933 }
 0x768   :  { %3282 = vpow2.f32 %v937_v18  ;;  %v936_v20 = vsub.f32 %v928_v14, %v934_v19 }
 0x76a   :  { %v939_v21 = vmul.f32 1.442695, %v936_v20 }
 0x76b   :  { %v952_v22 = vpop.permute.xlu1 %951 }
 0x76c   :  { %3284 = vpow2.f32 %v939_v21  ;;  %3083 = vmatpush3.msra.mxu0 %v952_v22 }
 0x76d   :  { %3092 = vmatprep.subr.mxu0 %v1116_v36 }
 0x775   :  { %v3283_v23 = vpop.eup %3282 }
 0x776   :  { %v941_v25 = vsel %vm594_vm13, %v3283_v23, 0.0 }
 0x777   :  { %942 = vadd.xlane.f32.xlu0 %v941_v25  ;;  %v1360_v25 = vld [vmem:[#allocation10 + $0x38] sm:$0xff] }
 0x779   :  { %v3285_v26 = vpop.eup %3284 }
 0x77a   :  { %v944_v28 = vsel %vm594_vm13, %v3285_v26, 0.0 }
 0x77b   :  { %945 = vadd.xlane.f32.xlu0 %v944_v28  ;;  %v1358_v28 = vld [vmem:[#allocation10 + $0x28] sm:$0xff] }
 0x791   :  { %1027 = vrot.lane.b32.xlu0 %v3659_v9, %s3520_s18  ;;  %v1114_v9 = vld [vmem:[#allocation7 + $0x8] sm:$0xff] }
 0x800   :  { %v943_v11 = vpop.xlane.xlu0 %942 }
 0x801   :  { %3286 = vrcp.f32 %v943_v11  ;;  %v1357_v11 = vld [vmem:[#allocation10 + $0x20] sm:$0xff] }
 0x804   :  { %v946_v29 = vpop.xlane.xlu0 %945 }
 0x805   :  { %3288 = vrcp.f32 %v946_v29  ;;  %v1356_v29 = vld [vmem:[#allocation10 + $0x18] sm:$0xff] }
 0x808   :  { %v1028_v30 = vpop.permute.xlu0 %1027 }
 0x809   :  { %3088 = vmatpush3.msra.mxu1 %v1028_v30  ;;  %v1355_v30 = vld [vmem:[#allocation10 + $0x10] sm:$0xff] }
 0x80a   :  { %3103 = vmatprep.subr.mxu1 %v1248_v0 }
 0x80e   :  { %v3287_v31 = vpop.eup %3286 }
 0x80f   :  { %v949_v32 = vmul.f32 %v3287_v31, %v3283_v23  ;;  %v1354_v31 = vld [vmem:[#allocation10 + $0x8] sm:$0xff] }
 0x811   :  { %3085 = vmatmul.mubr.msk.f32.vlgmr.msra.gmra.mxu0 %vm594_vm13, %v949_v32  ;;  %v1353_v32 = vld [vmem:[#allocation10] sm:$0xff] }
 0x812   :  { %v3289_v34 = vpop.eup %3288  ;;  %3093 = vmatpush3.msra.mxu0 %v1116_v36 }
 0x813   :  { %v950_v35 = vmul.f32 %v3289_v34, %v3285_v26  ;;  %3094 = vmatprep.subr.mxu0 %v1115_v37  ;;  %v1359_v26 = vld [vmem:[#allocation10 + $0x30] sm:$0xff]  ;;  %v2850_v34 = vld [vmem:[#allocation13 + $0x8] ss:$0 sm:$0xff] }
 0x814   :  { %3095 = vmatpush3.msra.mxu0 %v1115_v37 }
 0x815   :  { %3090 = vmatmul.mubr.msk.f32.vlgmr.msra.gmra.mxu1 %vm594_vm13, %v950_v35  ;;  %3096 = vmatprep.subr.mxu0 %v1114_v9 }
 0x816   :  { %3097 = vmatpush3.msra.mxu0 %v1114_v9  ;;  %3104 = vmatpush3.msra.mxu1 %v1248_v0 }
 0x817   :  { %3098 = vmatprep.subr.mxu0 %v1113_v24 }
 0x818   :  { %3099 = vmatpush3.msra.mxu0 %v1113_v24 }
 0x819   :  { %3114 = vmatprep.subr.mxu0 %v1360_v25 }
 0x8d1   :  { %v1023_v38 = vpop.f32.mrf.mxu0 }
 0x8d2   :  { %1105 = vrot.lane.b32.xlu1 %v1023_v38, %s3521_s19 }
 0x8d3   :  { %v3086_v39 = vpop.f32.mrf.mxu0 }
 0x8d5   :  { %v1099_v40 = vpop.f32.mrf.mxu1 }
 0x8d6   :  { %1107 = vrot.lane.b32.xlu1 %v1099_v40, %s3521_s19 }
 0x8d7   :  { %v3091_v41 = vpop.f32.mrf.mxu1 }
 0x944   :  { %v1106_v42 = vpop.permute.xlu1 %1105 }
 0x945   :  { %v1111_v43 = vsel %vm428_vm12, %v3724_v61, %v1106_v42 }
 0x946   :  { %3100 = vmatprep.mubr.msk.f32.mxu0 %vm268_vm10, %v1111_v43 }
 0x948   :  { %v1108_v44 = vpop.permute.xlu1 %1107 }
 0x949   :  { %v1112_v45 = vsel %vm428_vm12, %v3726_v63, %v1108_v44 }
 0x94a   :  { %3101 = vmatmul.mubr.msk.f32.vlgmr.msra.gmra.mxu0 %vm268_vm10, %v1112_v45 }
 0x94b   :  { %3115 = vmatpush3.msra.mxu0 %v1360_v25  ;;  %v2856_v25 = vld [vmem:[#allocation13 + $0xa] ss:$0 sm:$0xff] }
 0x94c   :  { %3116 = vmatprep.subr.mxu0 %v1359_v26 }
 0x94d   :  { %3117 = vmatpush3.msra.mxu0 %v1359_v26 }
 0x94e   :  { %3118 = vmatprep.subr.mxu0 %v1358_v28 }
 0x94f   :  { %3119 = vmatpush3.msra.mxu0 %v1358_v28 }
 0x950   :  { %3120 = vmatprep.subr.mxu0 %v1357_v11 }
 0x951   :  { %3121 = vmatpush3.msra.mxu0 %v1357_v11 }
 0x952   :  { %3122 = vmatprep.subr.mxu0 %v1356_v29 }
 0x953   :  { %3123 = vmatpush3.msra.mxu0 %v1356_v29 }
 0x954   :  { %3124 = vmatprep.subr.mxu0 %v1355_v30 }
 0x955   :  { %3125 = vmatpush3.msra.mxu0 %v1355_v30  ;;  %v2857_v30 = vld [vmem:[#allocation13 + $0xb] ss:$0 sm:$0xff] }
 0x956   :  { %3126 = vmatprep.subr.mxu0 %v1354_v31 }
 0x957   :  { %3127 = vmatpush3.msra.mxu0 %v1354_v31 }
 0x958   :  { %3128 = vmatprep.subr.mxu0 %v1353_v32 }
 0x959   :  { %3129 = vmatpush3.msra.mxu0 %v1353_v32 }
 0x95a   :  { %3154 = vmatprep.subr.mxu0 %v3513_v6 }
 0xa0a   :  { %v3102_v47 = vpop.f32.mrf.mxu0 }
 0xa0b   :  { %v1200_v48 = vadd.f32 %v3102_v47, %v2845_v46 }
 0xa0c   :  { %v1194_v49 = vpop.f32.mrf.mxu0 }
 0xa0d   :  { %v1195_v50 = vadd.f32 %v2845_v46, %v1194_v49  ;;  %v1204_v51 = vadd.f32 %v1200_v48, %v3649_v5 }
 0xa0f   :  { %v1210_v52 = vsel %vm268_vm10, %v1204_v51, 0.0  ;;  %v1203_v53 = vadd.f32 %v1195_v50, %v3645_v3  ;;  %v1247_v3 = vld [vmem:[#allocation8 + $0x10] sm:$0xff] }
 0xa10   :  { %1211 = vadd.xlane.f32.xlu1 %v1210_v52  ;;  %3105 = vmatprep.subr.mxu1 %v1247_v3 }
 0xa11   :  { %v1207_v54 = vsel %vm268_vm10, %v1203_v53, 0.0  ;;  %3106 = vmatpush3.msra.mxu1 %v1247_v3 }
 0xa12   :  { %1208 = vadd.xlane.f32.xlu0 %v1207_v54  ;;  %3107 = vmatprep.subr.mxu1 %v1246_v1 }
 0xa13   :  { %3108 = vmatpush3.msra.mxu1 %v1246_v1 }
 0xa14   :  { %3109 = vmatprep.subr.mxu1 %v1245_v2 }
 0xa15   :  { %3110 = vmatpush3.msra.mxu1 %v1245_v2 }
 0xa99   :  { %v1212_v55 = vpop.xlane.xlu1 %1211 }
 0xa9a   :  { %v1214_v56 = vmul.f32 0.03125, %v1212_v55  ;;  %v2853_v55 = vld [vmem:[#allocation13 + $0x9] ss:$0 sm:$0xff] }
 0xa9b   :  { %v1209_v57 = vpop.xlane.xlu0 %1208 }
 0xa9c   :  { %v1213_v58 = vmul.f32 0.03125, %v1209_v57  ;;  %v1216_v59 = vsub.f32 %v1204_v51, %v1214_v56 }
 0xa9e   :  { %v1215_v60 = vsub.f32 %v1203_v53, %v1213_v58  ;;  %v1218_v63 = vmul.f32 %v1216_v59, %v1216_v59 }
 0xaa0   :  { %v1217_v61 = vmul.f32 %v1215_v60, %v1215_v60  ;;  %v1222_v5 = vsel %vm268_vm10, %v1218_v63, 0.0 }
 0xaa2   :  { %v1219_v62 = vsel %vm268_vm10, %v1217_v61, 0.0 }
 0xaa3   :  { %1220 = vadd.xlane.f32.xlu0 %v1219_v62 }
 0xaa7   :  { %1223 = vadd.xlane.f32.xlu0 %v1222_v5 }
 0xb2c   :  { %v1221_v4 = vpop.xlane.xlu0 %1220 }
 0xb2d   :  { %v1225_v7 = vmul.f32 0.03125, %v1221_v4 }
 0xb2f   :  { %v1227_v8 = vadd.f32 1e-12, %v1225_v7 }
 0xb30   :  { %v1224_v10 = vpop.xlane.xlu0 %1223 }
 0xb31   :  { %3290 = vrsqrt.f32 %v1227_v8  ;;  %v1226_v12 = vmul.f32 0.03125, %v1224_v10 }
 0xb33   :  { %v1228_v13 = vadd.f32 1e-12, %v1226_v12 }
 0xb35   :  { %3292 = vrsqrt.f32 %v1228_v13  ;;  %v1494_v13 = vld [vmem:[#allocation5 + $0x38] sm:$0xff] }
 0xb36   :  { %3133 = vmatprep.subr.mxu1 %v1494_v13 }
 0xb3e   :  { %v3291_v14 = vpop.eup %3290 }
 0xb3f   :  { %v1231_v16 = vmul.f32 %v3291_v14, %v1215_v60  ;;  %v1493_v14 = vld [vmem:[#allocation5 + $0x30] sm:$0xff] }
 0xb41   :  { %v1237_v18 = vmul.f32 %v2848_v15, %v1231_v16  ;;  %v1491_v16 = vld [vmem:[#allocation5 + $0x20] sm:$0xff] }
 0xb42   :  { %v3293_v19 = vpop.eup %3292 }
 0xb43   :  { %v1232_v20 = vmul.f32 %v3293_v19, %v1216_v59  ;;  %v3754_v21 = vadd.f32 %v2849_v17, %v1237_v18 }
 0xb45   :  { %v1238_v22 = vmul.f32 %v2848_v15, %v1232_v20  ;;  %3111 = vmatprep.mubr.msk.f32.mxu1 %vm268_vm10, %v3754_v21  ;;  %v1492_v15 = vld [vmem:[#allocation5 + $0x28] sm:$0xff] }
 0xb47   :  { %v1244_v23 = vadd.f32 %v2849_v17, %v1238_v22 }
 0xb49   :  { %3112 = vmatmul.mubr.msk.f32.vlgmr.msra.gmra.mxu1 %vm268_vm10, %v1244_v23 }
 0xb4a   :  { %3134 = vmatpush3.msra.mxu1 %v1494_v13 }
 0xb4b   :  { %3135 = vmatprep.subr.mxu1 %v1493_v14 }
 0xb4c   :  { %3136 = vmatpush3.msra.mxu1 %v1493_v14 }
 0xb4d   :  { %3137 = vmatprep.subr.mxu1 %v1492_v15 }
 0xb4e   :  { %3138 = vmatpush3.msra.mxu1 %v1492_v15 }
 0xb4f   :  { %3139 = vmatprep.subr.mxu1 %v1491_v16 }
 0xb50   :  { %3140 = vmatpush3.msra.mxu1 %v1491_v16 }
 0xb51   :  { %3144 = vmatprep.subr.mxu1 %v3513_v6 }
 0xc09   :  { %v3113_v35 = vpop.f32.mrf.mxu1 }
 0xc0a   :  { %v1332_v36 = vadd.f32 %v3113_v35, %v2850_v34  ;;  %v2858_v35 = vld [vmem:[#allocation13 + $0xc] ss:$0 sm:$0xff] }
 0xc0b   :  { %v1326_v37 = vpop.f32.mrf.mxu1 }
 0xc0c   :  { %v1338_v9 = vmul.f32 0.044715, %v1332_v36  ;;  %v1327_v24 = vadd.f32 %v2850_v34, %v1326_v37  ;;  %v1336_v52 = vmul.f32 0.5, %v1332_v36 }
 0xc0e   :  { %v1340_v38 = vmul.f32 %v1338_v9, %v1332_v36  ;;  %v1337_v39 = vmul.f32 0.044715, %v1327_v24  ;;  %v1335_v50 = vmul.f32 0.5, %v1327_v24 }
 0xc10   :  { %v1342_v40 = vmul.f32 %v1340_v38, %v1332_v36  ;;  %v1339_v41 = vmul.f32 %v1337_v39, %v1327_v24 }
 0xc12   :  { %v1344_v42 = vadd.f32 %v1342_v40, %v1332_v36  ;;  %v1341_v43 = vmul.f32 %v1339_v41, %v1327_v24 }
 0xc14   :  { %v1346_v44 = vmul.f32 0.7978846, %v1344_v42  ;;  %v1343_v45 = vadd.f32 %v1341_v43, %v1327_v24 }
 0xc16   :  { %3294 = vtanh.f32 %v1346_v44  ;;  %v1345_v46 = vmul.f32 0.7978846, %v1343_v45 }
 0xc18   :  { %3296 = vtanh.f32 %v1345_v46 }
 0xc23   :  { %v3295_v47 = vpop.eup %3294 }
 0xc24   :  { %v1350_v49 = vadd.f32 1.0, %v3295_v47 }
 0xc25   :  { %v3297_v48 = vpop.eup %3296 }
 0xc26   :  { %v1349_v51 = vadd.f32 1.0, %v3297_v48  ;;  %v1352_v54 = vmul.f32 %v1350_v49, %v1336_v52 }
 0xc28   :  { %v1351_v53 = vmul.f32 %v1349_v51, %v1335_v50 }
 0xc2a   :  { %3130 = vmatprep.mubr.msk.f32.mxu0 %vm1366_vm14, %v1351_v53 }
 0xc2b   :  { %3131 = vmatmul.mubr.msk.f32.vlgmr.msra.gmra.mxu0 %vm1366_vm14, %v1352_v54 }
 0xc2c   :  { %3156 = vmatprep.mubr.msk.f32.mxu0 %vm3514_vm11, %v3513_v6 }
 0xceb   :  { %v3132_v56 = vpop.f32.mrf.mxu0 }
 0xcec   :  { %v1445_v57 = vadd.f32 %v3132_v56, %v2853_v55 }
 0xced   :  { %v1439_v58 = vpop.f32.mrf.mxu0 }
 0xcee   :  { %v1440_v59 = vadd.f32 %v2853_v55, %v1439_v58  ;;  %v1449_v60 = vadd.f32 %v1445_v57, %v1244_v23 }
 0xcf0   :  { %v1455_v61 = vsel %vm268_vm10, %v1449_v60, 0.0  ;;  %v1448_v62 = vadd.f32 %v1440_v59, %v3754_v21 }
 0xcf1   :  { %1456 = vadd.xlane.f32.xlu0 %v1455_v61 }
 0xcf2   :  { %v1452_v63 = vsel %vm268_vm10, %v1448_v62, 0.0 }
 0xcf3   :  { %1453 = vadd.xlane.f32.xlu1 %v1452_v63 }
 0xd7a   :  { %v1457_v5 = vpop.xlane.xlu0 %1456 }
 0xd7b   :  { %v1459_v0 = vmul.f32 0.03125, %v1457_v5 }
 0xd7c   :  { %v1454_v3 = vpop.xlane.xlu1 %1453 }
 0xd7d   :  { %v1461_v1 = vsub.f32 %v1449_v60, %v1459_v0  ;;  %v1458_v2 = vmul.f32 0.03125, %v1454_v3 }
 0xd7f   :  { %v1460_v4 = vsub.f32 %v1448_v62, %v1458_v2  ;;  %v1463_v7 = vmul.f32 %v1461_v1, %v1461_v1 }
 0xd81   :  { %v1467_v8 = vsel %vm268_vm10, %v1463_v7, 0.0  ;;  %v1462_v10 = vmul.f32 %v1460_v4, %v1460_v4 }
 0xd82   :  { %1468 = vadd.xlane.f32.xlu0 %v1467_v8 }
 0xd83   :  { %v1464_v12 = vsel %vm268_vm10, %v1462_v10, 0.0 }
 0xd84   :  { %1465 = vadd.xlane.f32.xlu1 %v1464_v12 }
 0xe0b   :  { %v1469_v17 = vpop.xlane.xlu0 %1468 }
 0xe0c   :  { %v1471_v18 = vmul.f32 0.03125, %v1469_v17 }
 0xe0d   :  { %v1466_v19 = vpop.xlane.xlu1 %1465 }
 0xe0e   :  { %v1473_v20 = vadd.f32 1e-12, %v1471_v18  ;;  %v1470_v21 = vmul.f32 0.03125, %v1466_v19 }
 0xe10   :  { %3298 = vrsqrt.f32 %v1473_v20  ;;  %v1472_v22 = vadd.f32 1e-12, %v1470_v21 }
 0xe12   :  { %3300 = vrsqrt.f32 %v1472_v22 }
 0xe1d   :  { %v3299_v23 = vpop.eup %3298 }
 0xe1e   :  { %v1477_v26 = vmul.f32 %v3299_v23, %v1461_v1 }
 0xe1f   :  { %v3301_v28 = vpop.eup %3300 }
 0xe20   :  { %v1476_v11 = vmul.f32 %v3301_v28, %v1460_v4  ;;  %v1483_v29 = vmul.f32 %v2856_v25, %v1477_v26 }
 0xe22   :  { %v1482_v31 = vmul.f32 %v2856_v25, %v1476_v11  ;;  %v3772_v34 = vadd.f32 %v2857_v30, %v1483_v29 }
 0xe24   :  { %v3770_v32 = vadd.f32 %v2857_v30, %v1482_v31 }
 0xe26   :  { %3141 = vmatprep.mubr.msk.f32.mxu1 %vm268_vm10, %v3770_v32 }
 0xe27   :  { %3142 = vmatmul.mubr.msk.f32.vlgmr.msra.gmra.mxu1 %vm268_vm10, %v3772_v34 }
 0xe28   :  { %3146 = vmatprep.mubr.msk.f32.mxu1 %vm3514_vm11, %v3513_v6 }
 0xee7   :  { %v3143_v36 = vpop.f32.mrf.mxu1 }
 0xee8   :  { %v3780_v37 = vadd.f32 %v3143_v36, %v2858_v35 }
 0xee9   :  { %v1572_v9 = vpop.f32.mrf.mxu1 }
 0xeea   :  { %v3782_v24 = vadd.f32 %v2858_v35, %v1572_v9  ;;  %1659 = vrot.lane.b32.xlu0 %v3780_v37, %s3515_s0 }
 0xeec   :  { %1582 = vrot.lane.b32.xlu1 %v3782_v24, %s3515_s0 }
 0xf5c   :  { %v1660_v39 = vpop.permute.xlu0 %1659 }
 0xf5e   :  { %v1583_v38 = vpop.permute.xlu1 %1582 }
 0xf5f   :  { %3145 = vmatpush3.xpose.msk.msra.mxu1 %vm428_vm12, %v1583_v38 }
 0xf60   :  { %3149 = vmatprep.subr.mxu1 %v3513_v6 }
 0xf62   :  { %3147 = vmatmul.mubr.msk.f32.vlgmr.msra.gmra.mxu1 %vm428_vm12, %v3782_v24 }
 0xf63   :  { %3150 = vmatpush3.xpose.msk.msra.mxu1 %vm428_vm12, %v1660_v39  ;;  %3151 = vmatprep.mubr.msk.f32.mxu1 %vm3514_vm11, %v3513_v6 }
 0xf64   :  { %3159 = vmatprep.subr.mxu1 %v3513_v6 }
 0xf66   :  { %3152 = vmatmul.mubr.msk.f32.vlgmr.msra.gmra.mxu1 %vm428_vm12, %v3780_v37 }
 0xf67   :  { %3161 = vmatprep.mubr.msk.f32.mxu1 %vm3514_vm11, %v3513_v6 }
0x1022   :  { %v1654_v40 = vpop.f32.mrf.mxu1 }
0x1023   :  { %v1735_v41 = vmul.f32 0.25, %v1654_v40 }
0x1024   :  { %v3148_v42 = vpop.f32.mrf.mxu1 }
0x1025   :  { %v1737_v43 = vadd.f32 %v1735_v41, %v3684_v27 }
0x1026   :  { %v1731_v44 = vpop.f32.mrf.mxu1 }
0x1027   :  { %v1736_v45 = vmul.f32 0.25, %v1731_v44  ;;  %v1739_v46 = vsel %vm594_vm13, %v1737_v43, -inf  ;;  %v2261_v44 = vld [vmem:[#allocation7 + $0x38] sm:$0xff] }
0x1028   :  { %1740 = vmax.xlane.f32.xlu1 %v1739_v46  ;;  %v3153_v47 = vpop.f32.mrf.mxu1  ;;  %v2258_v46 = vld [vmem:[#allocation7 + $0x20] sm:$0xff] }
0x1029   :  { %v1738_v48 = vadd.f32 %v1736_v45, %v3687_v33  ;;  %v2260_v45 = vld [vmem:[#allocation7 + $0x30] sm:$0xff] }
0x102b   :  { %v1742_v49 = vsel %vm594_vm13, %v1738_v48, -inf }
0x102c   :  { %1743 = vmax.xlane.f32.xlu0 %v1742_v49 }
0x1039   :  { %1761 = vrot.lane.b32.xlu1 %v3782_v24, %s3517_s2 }
0x103d   :  { %1915 = vrot.lane.b32.xlu1 %v3782_v24, %s3518_s16 }
0x1041   :  { %1993 = vrot.lane.b32.xlu1 %v3780_v37, %s3518_s16 }
0x1042   :  { %1837 = vrot.lane.b32.xlu0 %v3780_v37, %s3517_s2 }
0x10b1   :  { %v1741_v50 = vpop.xlane.xlu1 %1740 }
0x10b2   :  { %v1745_v51 = vsub.f32 %v1737_v43, %v1741_v50 }
0x10b4   :  { %v1747_v52 = vmul.f32 1.442695, %v1745_v51 }
0x10b5   :  { %v1762_v53 = vpop.permute.xlu1 %1761  ;;  %v1744_v54 = vpop.xlane.xlu0 %1743 }
0x10b6   :  { %3302 = vpow2.f32 %v1747_v52  ;;  %v1746_v55 = vsub.f32 %v1738_v48, %v1744_v54  ;;  %3155 = vmatpush3.msra.mxu0 %v1762_v53 }
0x10b7   :  { %3164 = vmatprep.subr.mxu0 %v3513_v6 }
0x10b8   :  { %v1749_v56 = vmul.f32 1.442695, %v1746_v55  ;;  %v2873_v55 = vld [vmem:[#allocation13 + $0xd] ss:$0 sm:$0xff] }
0x10b9   :  { %v1838_v57 = vpop.permute.xlu0 %1837  ;;  %v1916_v62 = vpop.permute.xlu1 %1915 }
0x10ba   :  { %3304 = vpow2.f32 %v1749_v56  ;;  %3160 = vmatpush3.msra.mxu1 %v1838_v57 }
0x10bb   :  { %3169 = vmatprep.subr.mxu1 %v3513_v6 }
0x10bd   :  { %v1994_v63 = vpop.permute.xlu1 %1993 }
0x10c3   :  { %v3303_v58 = vpop.eup %3302 }
0x10c4   :  { %v1751_v59 = vsel %vm594_vm13, %v3303_v58, 0.0 }
0x10c5   :  { %1752 = vadd.xlane.f32.xlu1 %v1751_v59 }
0x10c7   :  { %v3305_v60 = vpop.eup %3304 }
0x10c8   :  { %v1754_v61 = vsel %vm594_vm13, %v3305_v60, 0.0 }
0x10c9   :  { %1755 = vadd.xlane.f32.xlu0 %v1754_v61 }
0x10d6   :  { %1991 = vrot.lane.b32.xlu1 %v3780_v37, %s3519_s17 }
0x10df   :  { %1913 = vrot.lane.b32.xlu0 %v3782_v24, %s3519_s17 }
0x114e   :  { %v1753_v5 = vpop.xlane.xlu1 %1752 }
0x114f   :  { %3306 = vrcp.f32 %v1753_v5 }
0x1152   :  { %v1756_v0 = vpop.xlane.xlu0 %1755  ;;  %v1992_v8 = vpop.permute.xlu1 %1991 }
0x1153   :  { %3308 = vrcp.f32 %v1756_v0 }
0x1156   :  { %v1914_v7 = vpop.permute.xlu0 %1913 }
0x115c   :  { %v3307_v3 = vpop.eup %3306 }
0x115d   :  { %v1759_v1 = vmul.f32 %v3307_v3, %v3303_v58 }
0x115f   :  { %3157 = vmatmul.mubr.msk.f32.vlgmr.msra.gmra.mxu0 %vm594_vm13, %v1759_v1 }
0x1160   :  { %v3309_v2 = vpop.eup %3308  ;;  %3165 = vmatpush3.xpose.msk.msra.mxu0 %vm428_vm12, %v1916_v62  ;;  %3166 = vmatprep.mubr.msk.f32.mxu0 %vm3514_vm11, %v3513_v6 }
0x1161   :  { %v1760_v4 = vmul.f32 %v3309_v2, %v3305_v60  ;;  %3174 = vmatprep.subr.mxu0 %v3513_v6 }
0x1163   :  { %3162 = vmatmul.mubr.msk.f32.vlgmr.msra.gmra.mxu1 %vm594_vm13, %v1760_v4  ;;  %3167 = vmatmul.mubr.msk.f32.vlgmr.msra.gmra.mxu0 %vm428_vm12, %v1914_v7 }
0x1164   :  { %3170 = vmatpush3.xpose.msk.msra.mxu1 %vm428_vm12, %v1994_v63  ;;  %3171 = vmatprep.mubr.msk.f32.mxu1 %vm3514_vm11, %v3513_v6 }
0x1165   :  { %3179 = vmatprep.subr.mxu1 %v3513_v6  ;;  %3176 = vmatprep.mubr.msk.f32.mxu0 %vm3514_vm11, %v3513_v6 }
0x1167   :  { %3172 = vmatmul.mubr.msk.f32.vlgmr.msra.gmra.mxu1 %vm428_vm12, %v1992_v8 }
0x1168   :  { %3181 = vmatprep.mubr.msk.f32.mxu1 %vm3514_vm11, %v3513_v6 }
0x121f   :  { %v3836_v10 = vpop.f32.mrf.mxu0 }
0x1221   :  { %v3158_v12 = vpop.f32.mrf.mxu0 }
0x1222   :  { %v2394_v12 = vld [vmem:[#allocation8 + $0x38] sm:$0xff] }
0x1223   :  { %v3838_v13 = vpop.f32.mrf.mxu1  ;;  %v1987_v14 = vpop.f32.mrf.mxu0 }
0x1224   :  { %v2069_v15 = vmul.f32 0.25, %v1987_v14  ;;  %v2391_v14 = vld [vmem:[#allocation8 + $0x20] sm:$0xff] }
0x1225   :  { %v3163_v16 = vpop.f32.mrf.mxu1  ;;  %v3168_v17 = vpop.f32.mrf.mxu0 }
0x1226   :  { %v2071_v18 = vadd.f32 %v2069_v15, %v3684_v27 }
0x1227   :  { %v2065_v19 = vpop.f32.mrf.mxu1 }
0x1228   :  { %v2070_v20 = vmul.f32 0.25, %v2065_v19  ;;  %v2073_v21 = vsel %vm594_vm13, %v2071_v18, -inf }
0x1229   :  { %2074 = vmax.xlane.f32.xlu0 %v2073_v21  ;;  %v3173_v22 = vpop.f32.mrf.mxu1 }
0x122a   :  { %v2072_v23 = vadd.f32 %v2070_v20, %v3687_v33  ;;  %v2876_v22 = vld [vmem:[#allocation13 + $0xe] ss:$0 sm:$0xff] }
0x122c   :  { %v2076_v25 = vsel %vm594_vm13, %v2072_v23, -inf }
0x122d   :  { %2077 = vmax.xlane.f32.xlu1 %v2076_v25  ;;  %v2877_v25 = vld [vmem:[#allocation13 + $0xf] ss:$0 sm:$0xff] }
0x123e   :  { %2095 = vrot.lane.b32.xlu1 %v3782_v24, %s3520_s18 }
0x12b2   :  { %v2075_v26 = vpop.xlane.xlu0 %2074 }
0x12b3   :  { %v2079_v28 = vsub.f32 %v2071_v18, %v2075_v26 }
0x12b5   :  { %v2081_v11 = vmul.f32 1.442695, %v2079_v28 }
0x12b6   :  { %v2078_v29 = vpop.xlane.xlu1 %2077 }
0x12b7   :  { %3310 = vpow2.f32 %v2081_v11  ;;  %v2080_v27 = vsub.f32 %v2072_v23, %v2078_v29 }
0x12b9   :  { %v2083_v30 = vmul.f32 1.442695, %v2080_v27 }
0x12ba   :  { %v2096_v31 = vpop.permute.xlu1 %2095 }
0x12bb   :  { %3312 = vpow2.f32 %v2083_v30  ;;  %3175 = vmatpush3.msra.mxu0 %v2096_v31  ;;  %v2507_v31 = vld [vmem:[#allocation10 + $0x78] sm:$0xff] }
0x12bc   :  { %3184 = vmatprep.subr.mxu0 %v2261_v44 }
0x12c4   :  { %v3311_v35 = vpop.eup %3310 }
0x12c5   :  { %v2085_v36 = vsel %vm594_vm13, %v3311_v35, 0.0 }
0x12c6   :  { %2086 = vadd.xlane.f32.xlu0 %v2085_v36  ;;  %v2505_v36 = vld [vmem:[#allocation10 + $0x68] sm:$0xff] }
0x12c8   :  { %v3313_v33 = vpop.eup %3312 }
0x12c9   :  { %v2088_v9 = vsel %vm594_vm13, %v3313_v33, 0.0 }
0x12ca   :  { %2089 = vadd.xlane.f32.xlu0 %v2088_v9  ;;  %v2503_v9 = vld [vmem:[#allocation10 + $0x58] sm:$0xff] }
0x12e0   :  { %2171 = vrot.lane.b32.xlu0 %v3780_v37, %s3520_s18  ;;  %v2259_v37 = vld [vmem:[#allocation7 + $0x28] sm:$0xff] }
0x134f   :  { %v2087_v24 = vpop.xlane.xlu0 %2086 }
0x1350   :  { %3314 = vrcp.f32 %v2087_v24  ;;  %v2502_v24 = vld [vmem:[#allocation10 + $0x50] sm:$0xff] }
0x1353   :  { %v2090_v38 = vpop.xlane.xlu0 %2089 }
0x1354   :  { %3316 = vrcp.f32 %v2090_v38  ;;  %v2501_v38 = vld [vmem:[#allocation10 + $0x48] sm:$0xff] }
0x1357   :  { %v2172_v39 = vpop.permute.xlu0 %2171 }
0x1358   :  { %3180 = vmatpush3.msra.mxu1 %v2172_v39  ;;  %v2500_v39 = vld [vmem:[#allocation10 + $0x40] sm:$0xff] }
0x1359   :  { %3195 = vmatprep.subr.mxu1 %v2394_v12 }
0x135d   :  { %v3315_v40 = vpop.eup %3314 }
0x135e   :  { %v2093_v41 = vmul.f32 %v3315_v40, %v3311_v35  ;;  %v2506_v35 = vld [vmem:[#allocation10 + $0x70] sm:$0xff] }
0x135f   :  { %v2878_v40 = vld [vmem:[#allocation13 + $0x10] ss:$0 sm:$0xff] }
0x1360   :  { %3177 = vmatmul.mubr.msk.f32.vlgmr.msra.gmra.mxu0 %vm594_vm13, %v2093_v41 }
0x1361   :  { %v3317_v42 = vpop.eup %3316  ;;  %3185 = vmatpush3.msra.mxu0 %v2261_v44 }
0x1362   :  { %v2094_v43 = vmul.f32 %v3317_v42, %v3313_v33  ;;  %3186 = vmatprep.subr.mxu0 %v2260_v45  ;;  %v2504_v33 = vld [vmem:[#allocation10 + $0x60] sm:$0xff] }
0x1363   :  { %3187 = vmatpush3.msra.mxu0 %v2260_v45 }
0x1364   :  { %3182 = vmatmul.mubr.msk.f32.vlgmr.msra.gmra.mxu1 %vm594_vm13, %v2094_v43  ;;  %3188 = vmatprep.subr.mxu0 %v2259_v37 }
0x1365   :  { %3189 = vmatpush3.msra.mxu0 %v2259_v37  ;;  %3196 = vmatpush3.msra.mxu1 %v2394_v12 }
0x1366   :  { %3190 = vmatprep.subr.mxu0 %v2258_v46 }
0x1367   :  { %3191 = vmatpush3.msra.mxu0 %v2258_v46 }
0x1368   :  { %3206 = vmatprep.subr.mxu0 %v2507_v31 }
0x1420   :  { %v2167_v47 = vpop.f32.mrf.mxu0 }
0x1421   :  { %2249 = vrot.lane.b32.xlu1 %v2167_v47, %s3521_s19 }
0x1422   :  { %v3178_v48 = vpop.f32.mrf.mxu0 }
0x1424   :  { %v2243_v49 = vpop.f32.mrf.mxu1 }
0x1425   :  { %2251 = vrot.lane.b32.xlu1 %v2243_v49, %s3521_s19 }
0x1426   :  { %v3183_v50 = vpop.f32.mrf.mxu1 }
0x1493   :  { %v2250_v51 = vpop.permute.xlu1 %2249 }
0x1494   :  { %v2255_v52 = vsel %vm428_vm12, %v3836_v10, %v2250_v51 }
0x1495   :  { %3192 = vmatprep.mubr.msk.f32.mxu0 %vm268_vm10, %v2255_v52 }
0x1497   :  { %v2252_v53 = vpop.permute.xlu1 %2251 }
0x1498   :  { %v2256_v54 = vsel %vm428_vm12, %v3838_v13, %v2252_v53  ;;  %v2392_v13 = vld [vmem:[#allocation8 + $0x28] sm:$0xff] }
0x1499   :  { %3193 = vmatmul.mubr.msk.f32.vlgmr.msra.gmra.mxu0 %vm268_vm10, %v2256_v54 }
0x149a   :  { %3207 = vmatpush3.msra.mxu0 %v2507_v31 }
0x149b   :  { %3208 = vmatprep.subr.mxu0 %v2506_v35 }
0x149c   :  { %3209 = vmatpush3.msra.mxu0 %v2506_v35  ;;  %v2885_v35 = vld [vmem:[#allocation13 + $0x13] ss:$0 sm:$0xff] }
0x149d   :  { %3210 = vmatprep.subr.mxu0 %v2505_v36 }
0x149e   :  { %3211 = vmatpush3.msra.mxu0 %v2505_v36 }
0x149f   :  { %3212 = vmatprep.subr.mxu0 %v2504_v33 }
0x14a0   :  { %3213 = vmatpush3.msra.mxu0 %v2504_v33 }
0x14a1   :  { %3214 = vmatprep.subr.mxu0 %v2503_v9 }
0x14a2   :  { %3215 = vmatpush3.msra.mxu0 %v2503_v9 }
0x14a3   :  { %3216 = vmatprep.subr.mxu0 %v2502_v24 }
0x14a4   :  { %3217 = vmatpush3.msra.mxu0 %v2502_v24 }
0x14a5   :  { %3218 = vmatprep.subr.mxu0 %v2501_v38 }
0x14a6   :  { %3219 = vmatpush3.msra.mxu0 %v2501_v38 }
0x14a7   :  { %3220 = vmatprep.subr.mxu0 %v2500_v39 }
0x14a8   :  { %3221 = vmatpush3.msra.mxu0 %v2500_v39 }
0x1559   :  { %v3194_v56 = vpop.f32.mrf.mxu0 }
0x155a   :  { %v2345_v57 = vadd.f32 %v3194_v56, %v2873_v55 }
0x155b   :  { %v2339_v58 = vpop.f32.mrf.mxu0 }
0x155c   :  { %v2340_v59 = vadd.f32 %v2873_v55, %v2339_v58  ;;  %v2349_v60 = vadd.f32 %v2345_v57, %v3772_v34 }
0x155e   :  { %v2355_v61 = vsel %vm268_vm10, %v2349_v60, 0.0  ;;  %v2348_v62 = vadd.f32 %v2340_v59, %v3770_v32  ;;  %v2393_v32 = vld [vmem:[#allocation8 + $0x30] sm:$0xff] }
0x155f   :  { %2356 = vadd.xlane.f32.xlu1 %v2355_v61  ;;  %3197 = vmatprep.subr.mxu1 %v2393_v32 }
0x1560   :  { %v2352_v63 = vsel %vm268_vm10, %v2348_v62, 0.0  ;;  %3198 = vmatpush3.msra.mxu1 %v2393_v32 }
0x1561   :  { %2353 = vadd.xlane.f32.xlu0 %v2352_v63  ;;  %3199 = vmatprep.subr.mxu1 %v2392_v13 }
0x1562   :  { %3200 = vmatpush3.msra.mxu1 %v2392_v13 }
0x1563   :  { %3201 = vmatprep.subr.mxu1 %v2391_v14 }
0x1564   :  { %3202 = vmatpush3.msra.mxu1 %v2391_v14 }
0x1565   :  { %3225 = vmatprep.subr.mxu1 %v3513_v6 }
0x15e8   :  { %v2357_v5 = vpop.xlane.xlu1 %2356 }
0x15e9   :  { %v2359_v0 = vmul.f32 0.03125, %v2357_v5 }
0x15ea   :  { %v2354_v3 = vpop.xlane.xlu0 %2353 }
0x15eb   :  { %v2358_v1 = vmul.f32 0.03125, %v2354_v3  ;;  %v2361_v2 = vsub.f32 %v2349_v60, %v2359_v0 }
0x15ed   :  { %v2360_v4 = vsub.f32 %v2348_v62, %v2358_v1  ;;  %v2363_v10 = vmul.f32 %v2361_v2, %v2361_v2  ;;  %v2881_v62 = vld [vmem:[#allocation13 + $0x11] ss:$0 sm:$0xff] }
0x15ef   :  { %v2362_v7 = vmul.f32 %v2360_v4, %v2360_v4  ;;  %v2367_v34 = vsel %vm268_vm10, %v2363_v10, 0.0 }
0x15f1   :  { %v2364_v8 = vsel %vm268_vm10, %v2362_v7, 0.0 }
0x15f2   :  { %2365 = vadd.xlane.f32.xlu0 %v2364_v8 }
0x15f6   :  { %2368 = vadd.xlane.f32.xlu0 %v2367_v34 }
0x167b   :  { %v2366_v15 = vpop.xlane.xlu0 %2365 }
0x167c   :  { %v2370_v16 = vmul.f32 0.03125, %v2366_v15 }
0x167e   :  { %v2372_v17 = vadd.f32 1e-12, %v2370_v16 }
0x167f   :  { %v2369_v18 = vpop.xlane.xlu0 %2368 }
0x1680   :  { %3318 = vrsqrt.f32 %v2372_v17  ;;  %v2371_v19 = vmul.f32 0.03125, %v2369_v18  ;;  %v2639_v18 = vld [vmem:[#allocation11 + $0x18] sm:$0xff] }
0x1682   :  { %v2373_v20 = vadd.f32 1e-12, %v2371_v19  ;;  %v2638_v19 = vld [vmem:[#allocation11 + $0x10] sm:$0xff] }
0x1684   :  { %3320 = vrsqrt.f32 %v2373_v20  ;;  %v2637_v20 = vld [vmem:[#allocation11 + $0x8] sm:$0xff] }
0x168d   :  { %v3319_v21 = vpop.eup %3318 }
0x168e   :  { %v2376_v23 = vmul.f32 %v3319_v21, %v2360_v4  ;;  %v2636_v21 = vld [vmem:[#allocation11] sm:$0xff] }
0x1690   :  { %v2382_v26 = vmul.f32 %v2876_v22, %v2376_v23 }
0x1691   :  { %v3321_v28 = vpop.eup %3320 }
0x1692   :  { %v2377_v11 = vmul.f32 %v3321_v28, %v2361_v2  ;;  %v3867_v29 = vadd.f32 %v2877_v25, %v2382_v26 }
0x1694   :  { %v2383_v27 = vmul.f32 %v2876_v22, %v2377_v11  ;;  %3203 = vmatprep.mubr.msk.f32.mxu1 %vm268_vm10, %v3867_v29 }
0x1696   :  { %v2389_v30 = vadd.f32 %v2877_v25, %v2383_v27  ;;  %v2884_v27 = vld [vmem:[#allocation13 + $0x12] ss:$0 sm:$0xff] }
0x1698   :  { %3204 = vmatmul.mubr.msk.f32.vlgmr.msra.gmra.mxu1 %vm268_vm10, %v2389_v30 }
0x1699   :  { %3233 = vmatprep.mubr.msk.f32.mxu1 %vm3514_vm11, %v3513_v6  ;;  %3226 = vmatpush3.msra.mxu1 %v2639_v18 }
0x169a   :  { %3227 = vmatprep.subr.mxu1 %v3513_v6 }
0x169b   :  { %3228 = vmatpush3.msra.mxu1 %v2638_v19 }
0x169c   :  { %3229 = vmatprep.subr.mxu1 %v3513_v6 }
0x169d   :  { %3230 = vmatpush3.msra.mxu1 %v2637_v20 }
0x169e   :  { %3231 = vmatprep.subr.mxu1 %v3513_v6 }
0x169f   :  { %3232 = vmatpush3.msra.mxu1 %v2636_v21 }
0x16a0   :  { %3236 = vmatprep.subr.mxu1 %v3513_v6 }
0x1758   :  { %v3205_v41 = vpop.f32.mrf.mxu1 }
0x1759   :  { %v2478_v42 = vadd.f32 %v3205_v41, %v2878_v40  ;;  %v2726_v41 = vld [vmem:[%s3916_s9 + $0x18] sm:$0xff] }
0x175a   :  { %v2472_v43 = vpop.f32.mrf.mxu1 }
0x175b   :  { %v2484_v44 = vmul.f32 0.044715, %v2478_v42  ;;  %v2473_v45 = vadd.f32 %v2878_v40, %v2472_v43  ;;  %v2482_v59 = vmul.f32 0.5, %v2478_v42  ;;  %v2724_v43 = vld [vmem:[%s3916_s9 + $0x8] sm:$0xff] }
0x175d   :  { %v2486_v37 = vmul.f32 %v2484_v44, %v2478_v42  ;;  %v2483_v46 = vmul.f32 0.044715, %v2473_v45  ;;  %v2481_v57 = vmul.f32 0.5, %v2473_v45  ;;  %v2723_v44 = vld [vmem:[%s3916_s9] sm:$0xff] }
0x175f   :  { %v2488_v47 = vmul.f32 %v2486_v37, %v2478_v42  ;;  %v2485_v48 = vmul.f32 %v2483_v46, %v2473_v45 }
0x1761   :  { %v2490_v49 = vadd.f32 %v2488_v47, %v2478_v42  ;;  %v2487_v50 = vmul.f32 %v2485_v48, %v2473_v45  ;;  %v2725_v42 = vld [vmem:[%s3916_s9 + $0x10] sm:$0xff]  ;;  %s3472_s9 = scalar_lea.vmem %s2813_s29, 32 }
0x1762   :  { %p3473_p7 = scmp.ne.s32.totalorder %s2813_s29, %s3472_s9  ;;  %p3478_p9 = scmp.lt.s32.totalorder %s3472_s9, %s3472_s9 }
0x1763   :  { %v2492_v51 = vmul.f32 0.7978846, %v2490_v49  ;;  %v2489_v52 = vadd.f32 %v2487_v50, %v2473_v45  ;;  %v2886_v45 = vld [vmem:[#allocation13 + $0x2] ss:$0 sm:$0xff]  ;;  %v2888_v49 = vld [vmem:[#allocation13 + $0x3] ss:$0 sm:$0xff] }
0x1764   :  { %p3479_p10 = por %p3478_p9, %p3477_p8 }
0x1765   :  { %3322 = vtanh.f32 %v2492_v51  ;;  %v2491_v53 = vmul.f32 0.7978846, %v2489_v52 }
0x1766   :  { %p3480_p11 = pnand %p3479_p10, %p3473_p7 }
0x1767   :  { %3324 = vtanh.f32 %v2491_v53 }
0x1772   :  { %v3323_v54 = vpop.eup %3322 }
0x1773   :  { %v2496_v56 = vadd.f32 1.0, %v3323_v54 }
0x1774   :  { %v3325_v55 = vpop.eup %3324 }
0x1775   :  { %v2495_v58 = vadd.f32 1.0, %v3325_v55  ;;  %v2498_v61 = vmul.f32 %v2496_v56, %v2482_v59 }
0x1777   :  { %v2497_v60 = vmul.f32 %v2495_v58, %v2481_v57 }
0x1779   :  { %3222 = vmatprep.mubr.msk.f32.mxu0 %vm1366_vm14, %v2497_v60 }
0x177a   :  { %3223 = vmatmul.mubr.msk.f32.vlgmr.msra.gmra.mxu0 %vm1366_vm14, %v2498_v61 }
0x183a   :  { %v3224_v63 = vpop.f32.mrf.mxu0 }
0x183b   :  { %v2591_v5 = vadd.f32 %v3224_v63, %v2881_v62 }
0x183c   :  { %v2585_v0 = vpop.f32.mrf.mxu0 }
0x183d   :  { %v2586_v3 = vadd.f32 %v2881_v62, %v2585_v0  ;;  %v2595_v1 = vadd.f32 %v2591_v5, %v2389_v30 }
0x183f   :  { %v2601_v2 = vsel %vm268_vm10, %v2595_v1, 0.0  ;;  %v2594_v4 = vadd.f32 %v2586_v3, %v3867_v29 }
0x1840   :  { %2602 = vadd.xlane.f32.xlu1 %v2601_v2 }
0x1841   :  { %v2598_v7 = vsel %vm268_vm10, %v2594_v4, 0.0 }
0x1842   :  { %2599 = vadd.xlane.f32.xlu0 %v2598_v7 }
0x18c9   :  { %v2603_v8 = vpop.xlane.xlu1 %2602 }
0x18ca   :  { %v2605_v10 = vmul.f32 0.03125, %v2603_v8 }
0x18cb   :  { %v2600_v34 = vpop.xlane.xlu0 %2599 }
0x18cc   :  { %v2607_v12 = vsub.f32 %v2595_v1, %v2605_v10  ;;  %v2604_v32 = vmul.f32 0.03125, %v2600_v34 }
0x18ce   :  { %v2606_v13 = vsub.f32 %v2594_v4, %v2604_v32  ;;  %v2609_v14 = vmul.f32 %v2607_v12, %v2607_v12 }
0x18d0   :  { %v2613_v15 = vsel %vm268_vm10, %v2609_v14, 0.0  ;;  %v2608_v16 = vmul.f32 %v2606_v13, %v2606_v13 }
0x18d1   :  { %2614 = vadd.xlane.f32.xlu1 %v2613_v15 }
0x18d2   :  { %v2610_v17 = vsel %vm268_vm10, %v2608_v16, 0.0 }
0x18d3   :  { %2611 = vadd.xlane.f32.xlu0 %v2610_v17 }
0x195a   :  { %v2615_v22 = vpop.xlane.xlu1 %2614 }
0x195b   :  { %v2617_v23 = vmul.f32 0.03125, %v2615_v22 }
0x195c   :  { %v2612_v25 = vpop.xlane.xlu0 %2611 }
0x195d   :  { %v2619_v26 = vadd.f32 1e-12, %v2617_v23  ;;  %v2616_v28 = vmul.f32 0.03125, %v2612_v25 }
0x195f   :  { %3326 = vrsqrt.f32 %v2619_v26  ;;  %v2618_v11 = vadd.f32 1e-12, %v2616_v28 }
0x1961   :  { %3328 = vrsqrt.f32 %v2618_v11 }
0x196c   :  { %v3327_v29 = vpop.eup %3326 }
0x196d   :  { %v2623_v30 = vmul.f32 %v3327_v29, %v2607_v12 }
0x196e   :  { %v3329_v31 = vpop.eup %3328 }
0x196f   :  { %v2622_v36 = vmul.f32 %v3329_v31, %v2606_v13  ;;  %v2629_v33 = vmul.f32 %v2884_v27, %v2623_v30 }
0x1971   :  { %v2628_v9 = vmul.f32 %v2884_v27, %v2622_v36  ;;  %v2635_v24 = vadd.f32 %v2885_v35, %v2629_v33 }
0x1973   :  { %v2634_v38 = vadd.f32 %v2885_v35, %v2628_v9  ;;  %v2647_v39 = vrot.slane %v2635_v24, 7 }
0x1975   :  { %v2649_v40 = vsel %vm2648_vm15, %v2647_v39, %v2634_v38 }
0x1976   :  { %3234 = vmatmul.mubr.msk.f32.vlgmr.msra.gmra.mxu1 %vm268_vm10, %v2649_v40 }
0x1977   :  { %3244 = vmatprep.mubr.msk.f32.mxu1 %vm3514_vm11, %v3513_v6  ;;  %3237 = vmatpush3.msra.mxu1 %v2726_v41 }
0x1978   :  { %3238 = vmatprep.subr.mxu1 %v3513_v6 }
0x1979   :  { %3239 = vmatpush3.msra.mxu1 %v2725_v42 }
0x197a   :  { %3240 = vmatprep.subr.mxu1 %v3513_v6 }
0x197b   :  { %3241 = vmatpush3.msra.mxu1 %v2724_v43 }
0x197c   :  { %3242 = vmatprep.subr.mxu1 %v3513_v6 }
0x197d   :  { %3243 = vmatpush3.msra.mxu1 %v2723_v44 }
0x1a36   :  { %v2718_v37 = vpop.f32.mrf.mxu1 }
0x1a37   :  { %v2719_v46 = vadd.f32 %v2886_v45, %v2718_v37 }
0x1a38   :  { %v3235_v47 = vpop.f32.mrf.mxu1 }
0x1a39   :  { %3330 = vtanh.f32 %v2719_v46 }
0x1a46   :  { %v3331_v48 = vpop.eup %3330 }
0x1a47   :  { %3245 = vmatmul.mubr.msk.f32.vlgmr.msra.gmra.mxu1 %vm268_vm10, %v3331_v48 }
0x1b07   :  { %v2801_v50 = vpop.f32.mrf.mxu1 }
0x1b08   :  { %v2802_v51 = vadd.f32 %v2888_v49, %v2801_v50 }
0x1b09   :  { %v3246_v52 = vpop.f32.mrf.mxu1 }
0x1b0a   :  { %2805 = vst [vmem:[#allocation14] sm:$0x3] %v2802_v51 }
0x1b0b   :  { %3483 = shalt.err (!%p3480_p11)
}
0x1b0c   :  { %2815 = dma.vmem_to_hbm [thread:$0]  %s2813_s29, 32, %s3918_s11, [#allocation4]  }
0x1b0d   :  { %3500 = dma.done.wait [#allocation4], 32  }
0x1b0e   :  { %3501 = vsyncadd [#allocation4], 4294967264 }
0x1b0f   :  { %2819 = vsyncpa [#allocation3], 1 }
0x1b10   :  { %2820 = vsyncpa [#allocation6], 1 }
0x1b11   :  { %2821 = vsyncpa [#allocation9], 1 }
0x1b12   :  { %2822 = vsyncpa [#allocation12], 1 }
0x1b13   :  { %2823 = vsyncpa [#allocation4], 1 }

</bundles_post_ra>
